<compile_context>
chip_gen: v7x
topology: tpu7x:2x2x1
jax: 0.10.0
libtpu: 0.0.40
codegen_flags: <defaults>
</compile_context>

<pallas_src>
import math

import jax
import jax.numpy as jnp
from jax import lax
from jax.experimental import pallas as pl
from jax.experimental.pallas import tpu as pltpu

# ---- small BERT-like config ----
VOCAB = 100
TYPE_VOCAB = 2
MAX_POS = 32
HIDDEN = 32
N_LAYERS = 2
N_HEADS = 4
HEAD_DIM = HIDDEN // N_HEADS
FFN = 64
BATCH = 2
SEQ = 8
LN_EPS = 1e-12

PACK_KEYS = ("emb_ln_g", "emb_ln_b",
             "wqkv", "bqkv", "wo", "bo", "ln1_g", "ln1_b",
             "wf1", "bf1", "wf2", "bf2", "ln2_g", "ln2_b",
             "wp", "bp", "wc", "bc")


def _gelu(x):
    # tanh-approx GELU. TODO(synk): HF BERT default "gelu" is the exact erf form (~1e-3 drift).
    c = 0.7978845608028654  # sqrt(2/pi)
    return 0.5 * x * (1.0 + jnp.tanh(c * (x + 0.044715 * x * x * x)))


def _layernorm(x, g, b):
    mu = jnp.mean(x, axis=-1, keepdims=True)
    var = jnp.mean(jnp.square(x - mu), axis=-1, keepdims=True)
    return (x - mu) * lax.rsqrt(var + LN_EPS) * g + b


# ---------------- fused encoder kernel (one grid step == one batch element) ----------------

def _encoder_kernel(emb_ref, mask_ref,
                    emb_g_ref, emb_b_ref,
                    wqkv_ref, bqkv_ref, wo_ref, bo_ref, ln1g_ref, ln1b_ref,
                    wf1_ref, bf1_ref, wf2_ref, bf2_ref, ln2g_ref, ln2b_ref,
                    wp_ref, bp_ref, wc_ref, bc_ref,
                    logits_ref):
    # additive attention mask over key positions: [1, S]
    amask = (1.0 - mask_ref[0]) * -10000.0

    # embedding LayerNorm (no residual)
    h = _layernorm(emb_ref[0], emb_g_ref[...], emb_b_ref[...])          # [S, H]

    for l in range(N_LAYERS):
        # ---- fused QKV projection (W_q, b_q pre-scaled by 1/sqrt(head_dim)) ----
        qkv = jnp.dot(h, wqkv_ref[l], preferred_element_type=jnp.float32) + bqkv_ref[l]  # [S, 3H]
        wo_l = wo_ref[l]

        # ---- multi-head attention; head split/merge via static lane slices ----
        attn = jnp.zeros((SEQ, HIDDEN), jnp.float32)
        for hd in range(N_HEADS):
            lo = hd * HEAD_DIM
            q_h = qkv[:, lo:lo + HEAD_DIM]                               # [S, D]
            k_h = qkv[:, HIDDEN + lo:HIDDEN + lo + HEAD_DIM]             # [S, D]
            v_h = qkv[:, 2 * HIDDEN + lo:2 * HIDDEN + lo + HEAD_DIM]     # [S, D]
            # q @ k^T without an explicit transpose
            s = lax.dot_general(q_h, k_h, (((1,), (1,)), ((), ())),
                                preferred_element_type=jnp.float32)      # [S, S]
            s = s + amask
            s = s - jnp.max(s, axis=-1, keepdims=True)
            p = jnp.exp(s)
            p = p / jnp.sum(p, axis=-1, keepdims=True)
            ctx = jnp.dot(p, v_h, preferred_element_type=jnp.float32)    # [S, D]
            # merge-heads fused with the output projection
            attn = attn + jnp.dot(ctx, wo_l[lo:lo + HEAD_DIM, :],
                                  preferred_element_type=jnp.float32)    # [S, H]

        h = _layernorm(attn + bo_ref[l] + h, ln1g_ref[l], ln1b_ref[l])

        # ---- feed-forward (gelu) + residual LayerNorm ----
        ffn = _gelu(jnp.dot(h, wf1_ref[l], preferred_element_type=jnp.float32) + bf1_ref[l])
        ffn = jnp.dot(ffn, wf2_ref[l], preferred_element_type=jnp.float32) + bf2_ref[l]
        h = _layernorm(ffn + h, ln2g_ref[l], ln2b_ref[l])

    # ---- pooler (tanh on [CLS]) + classifier ----
    cls = h[0:1, :]                                                      # [1, H]
    pooled = jnp.tanh(jnp.dot(cls, wp_ref[...],
                              preferred_element_type=jnp.float32) + bp_ref[...])
    # classifier weight stored transposed as [1, H]: logits = sum(pooled * w) + b
    logits = jnp.sum(pooled * wc_ref[...], axis=-1, keepdims=True) + bc_ref[...]  # [1, 1]
    logits_ref[0] = logits


def clrp_encode(packed, emb, mask):
    """emb: [B, S, H] f32, mask: [B, 1, S] f32 -> logits [B, 1]."""
    B = emb.shape[0]

    def rep(shape):
        zeros = (0,) * len(shape)
        return pl.BlockSpec(shape, lambda b: zeros)

    in_specs = [
        pl.BlockSpec((1, SEQ, HIDDEN), lambda b: (b, 0, 0)),   # emb
        pl.BlockSpec((1, 1, SEQ), lambda b: (b, 0, 0)),        # mask
        rep((1, HIDDEN)), rep((1, HIDDEN)),                    # emb LN gamma/beta
        rep((N_LAYERS, HIDDEN, 3 * HIDDEN)), rep((N_LAYERS, 1, 3 * HIDDEN)),   # W_qkv, b_qkv
        rep((N_LAYERS, HIDDEN, HIDDEN)), rep((N_LAYERS, 1, HIDDEN)),           # W_o, b_o
        rep((N_LAYERS, 1, HIDDEN)), rep((N_LAYERS, 1, HIDDEN)),                # attn LN
        rep((N_LAYERS, HIDDEN, FFN)), rep((N_LAYERS, 1, FFN)),                 # W_ffn1, b_ffn1
        rep((N_LAYERS, FFN, HIDDEN)), rep((N_LAYERS, 1, HIDDEN)),              # W_ffn2, b_ffn2
        rep((N_LAYERS, 1, HIDDEN)), rep((N_LAYERS, 1, HIDDEN)),                # ffn LN
        rep((HIDDEN, HIDDEN)), rep((1, HIDDEN)),                               # pooler
        rep((1, HIDDEN)), rep((1, 1)),                                         # classifier (W^T, b)
    ]

    out = pl.pallas_call(
        _encoder_kernel,
        out_shape=jax.ShapeDtypeStruct((B, 1, 1), jnp.float32),
        grid=(B,),
        in_specs=in_specs,
        out_specs=pl.BlockSpec((1, 1, 1), lambda b: (b, 0, 0)),
        compiler_params=pltpu.CompilerParams(dimension_semantics=("parallel",)),
    )(emb, mask, *[packed[k] for k in PACK_KEYS])
    return out.reshape(B, 1)


# ---------------- parameters (deterministic, synthetic) ----------------

def init_params(key):
    def nxt():
        nonlocal key
        key, sub = jax.random.split(key)
        return sub

    def dense(din, dout):
        return (0.02 * jax.random.normal(nxt(), (din, dout), jnp.float32),
                jnp.zeros((dout,), jnp.float32))

    params = {
        "word_emb": 0.02 * jax.random.normal(nxt(), (VOCAB, HIDDEN), jnp.float32),
        "pos_emb": 0.02 * jax.random.normal(nxt(), (MAX_POS, HIDDEN), jnp.float32),
        "type_emb": 0.02 * jax.random.normal(nxt(), (TYPE_VOCAB, HIDDEN), jnp.float32),
        "emb_ln": (jnp.ones((HIDDEN,), jnp.float32), jnp.zeros((HIDDEN,), jnp.float32)),
        "layers": [],
        "pooler": dense(HIDDEN, HIDDEN),
        "classifier": dense(HIDDEN, 1),
    }
    for _ in range(N_LAYERS):
        params["layers"].append(dict(
            q=dense(HIDDEN, HIDDEN), k=dense(HIDDEN, HIDDEN), v=dense(HIDDEN, HIDDEN),
            attn_out=dense(HIDDEN, HIDDEN),
            attn_ln=(jnp.ones((HIDDEN,), jnp.float32), jnp.zeros((HIDDEN,), jnp.float32)),
            ffn_in=dense(HIDDEN, FFN), ffn_out=dense(FFN, HIDDEN),
            ffn_ln=(jnp.ones((HIDDEN,), jnp.float32), jnp.zeros((HIDDEN,), jnp.float32)),
        ))
    return params


def pack_params(params):
    """One-time constant folding: fuse QKV weights, pre-scale W_q by 1/sqrt(D),
    reshape biases / LN params to [1, N], stack per-layer tensors on a leading axis."""
    inv = 1.0 / math.sqrt(HEAD_DIM)
    layers = params["layers"]

    def stack(fn):
        return jnp.stack([fn(l) for l in layers], axis=0)

    return {
        "emb_ln_g": params["emb_ln"][0].reshape(1, HIDDEN),
        "emb_ln_b": params["emb_ln"][1].reshape(1, HIDDEN),
        "wqkv": stack(lambda l: jnp.concatenate(
            [l["q"][0] * inv, l["k"][0], l["v"][0]], axis=1)),
        "bqkv": stack(lambda l: jnp.concatenate(
            [l["q"][1] * inv, l["k"][1], l["v"][1]]).reshape(1, 3 * HIDDEN)),
        "wo": stack(lambda l: l["attn_out"][0]),
        "bo": stack(lambda l: l["attn_out"][1].reshape(1, HIDDEN)),
        "ln1_g": stack(lambda l: l["attn_ln"][0].reshape(1, HIDDEN)),
        "ln1_b": stack(lambda l: l["attn_ln"][1].reshape(1, HIDDEN)),
        "wf1": stack(lambda l: l["ffn_in"][0]),
        "bf1": stack(lambda l: l["ffn_in"][1].reshape(1, FFN)),
        "wf2": stack(lambda l: l["ffn_out"][0]),
        "bf2": stack(lambda l: l["ffn_out"][1].reshape(1, HIDDEN)),
        "ln2_g": stack(lambda l: l["ffn_ln"][0].reshape(1, HIDDEN)),
        "ln2_b": stack(lambda l: l["ffn_ln"][1].reshape(1, HIDDEN)),
        "wp": params["pooler"][0],
        "bp": params["pooler"][1].reshape(1, HIDDEN),
        "wc": params["classifier"][0].T,            # [1, HIDDEN]
        "bc": params["classifier"][1].reshape(1, 1),
    }


# ---------------- forward pass (mirrors CLRP.forward) ----------------

@jax.jit
def clrp_forward(params, packed, input_ids, attention_mask, token_type_ids):
    B, S = input_ids.shape
    pos = jnp.arange(S)
    # embedding gather stays in JAX; everything else runs inside the fused kernel
    emb = (params["word_emb"][input_ids]
           + params["pos_emb"][pos][None, :, :]
           + params["type_emb"][token_type_ids]).astype(jnp.float32)      # [B, S, H]
    mask = attention_mask.astype(jnp.float32).reshape(B, 1, S)
    return clrp_encode(packed, emb, mask)                                 # [B, 1]


# ---------------- pure-JAX reference (for a sanity check) ----------------

def clrp_reference(params, input_ids, attention_mask, token_type_ids):
    B, S = input_ids.shape
    hp = lax.Precision.HIGHEST
    pos = jnp.arange(S)
    emb = (params["word_emb"][input_ids] + params["pos_emb"][pos][None]
           + params["type_emb"][token_type_ids]).astype(jnp.float32)

    def ln(x, g, b):
        mu = jnp.mean(x, -1, keepdims=True)
        var = jnp.mean(jnp.square(x - mu), -1, keepdims=True)
        return (x - mu) * lax.rsqrt(var + LN_EPS) * g + b

    def lin(x, wb):
        w, b = wb
        return jnp.einsum("bsk,kn->bsn", x, w, precision=hp) + b

    g, b = params["emb_ln"]
    h = ln(emb, g, b)
    add_mask = (1.0 - attention_mask.astype(jnp.float32)) * -10000.0      # [B, S]

    for lyr in params["layers"]:
        def heads(t):
            return t.reshape(B, S, N_HEADS, HEAD_DIM).transpose(0, 2, 1, 3)
        q, k, v = heads(lin(h, lyr["q"])), heads(lin(h, lyr["k"])), heads(lin(h, lyr["v"]))
        s = jnp.einsum("bhqd,bhkd->bhqk", q, k, precision=hp) / math.sqrt(HEAD_DIM)
        s = s + add_mask[:, None, None, :]
        s = s - jnp.max(s, -1, keepdims=True)
        p = jnp.exp(s)
        p = p / jnp.sum(p, -1, keepdims=True)
        ctx = jnp.einsum("bhqk,bhkd->bhqd", p, v, precision=hp)
        ctx = ctx.transpose(0, 2, 1, 3).reshape(B, S, HIDDEN)
        g1, b1 = lyr["attn_ln"]
        h = ln(lin(ctx, lyr["attn_out"]) + h, g1, b1)
        f = lin(_gelu(lin(h, lyr["ffn_in"])), lyr["ffn_out"])
        g2, b2 = lyr["ffn_ln"]
        h = ln(f + h, g2, b2)

    cls = h[:, 0, :]
    wp, bp = params["pooler"]
    pooled = jnp.tanh(jnp.dot(cls, wp, precision=hp) + bp)
    wc, bc = params["classifier"]
    return jnp.dot(pooled, wc, precision=hp) + bc


if __name__ == "__main__":
    key = jax.random.PRNGKey(0)
    pkey, ikey = jax.random.split(key)
    params = init_params(pkey)
    packed = pack_params(params)

    input_ids = jax.random.randint(ikey, (BATCH, SEQ), 0, VOCAB, dtype=jnp.int32)
    attention_mask = jnp.ones((BATCH, SEQ), jnp.int32).at[1, 6:].set(0)
    token_type_ids = jnp.zeros((BATCH, SEQ), jnp.int32)

    logits = clrp_forward(params, packed, input_ids, attention_mask, token_type_ids)
    logits = jax.block_until_ready(logits)
    assert logits.shape == (BATCH, 1) and logits.dtype == jnp.float32

    ref = clrp_reference(params, input_ids, attention_mask, token_type_ids)
    max_err = float(jnp.max(jnp.abs(logits - ref)))
    assert max_err < 5e-3, f"mismatch vs reference: {max_err}"

    print("KERNEL_OK")
</pallas_src>

<mosaic_0001>
module attributes {stable_mosaic.version = 11 : i64} {
  func.func @_encoder_kernel(%arg0: i32, %arg1: memref<1x8x32xf32, #tpu.memory_space<vmem>>, %arg2: memref<1x1x8xf32, #tpu.memory_space<vmem>>, %arg3: memref<1x32xf32, #tpu.memory_space<vmem>>, %arg4: memref<1x32xf32, #tpu.memory_space<vmem>>, %arg5: memref<2x32x96xf32, #tpu.memory_space<vmem>>, %arg6: memref<2x1x96xf32, #tpu.memory_space<vmem>>, %arg7: memref<2x32x32xf32, #tpu.memory_space<vmem>>, %arg8: memref<2x1x32xf32, #tpu.memory_space<vmem>>, %arg9: memref<2x1x32xf32, #tpu.memory_space<vmem>>, %arg10: memref<2x1x32xf32, #tpu.memory_space<vmem>>, %arg11: memref<2x32x64xf32, #tpu.memory_space<vmem>>, %arg12: memref<2x1x64xf32, #tpu.memory_space<vmem>>, %arg13: memref<2x64x32xf32, #tpu.memory_space<vmem>>, %arg14: memref<2x1x32xf32, #tpu.memory_space<vmem>>, %arg15: memref<2x1x32xf32, #tpu.memory_space<vmem>>, %arg16: memref<2x1x32xf32, #tpu.memory_space<vmem>>, %arg17: memref<32x32xf32, #tpu.memory_space<vmem>>, %arg18: memref<1x32xf32, #tpu.memory_space<vmem>>, %arg19: memref<1x32xf32, #tpu.memory_space<vmem>>, %arg20: memref<1x1xf32, #tpu.memory_space<vmem>>, %arg21: memref<1x1x1xf32, #tpu.memory_space<vmem>>) attributes {dimension_semantics = [#tpu.dimension_semantics<parallel>], iteration_bounds = array<i64: 2>, scalar_prefetch = 0 : i64, scratch_operands = 0 : i64, tpu.core_type = #tpu.core_type<tc>, window_params = [{transform_indices = @transform_0, window_bounds = array<i64: 1, 8, 32>}, {transform_indices = @transform_1, window_bounds = array<i64: 1, 1, 8>}, {pipeline_mode = #tpu.pipeline_mode<synchronous>, transform_indices = @transform_2, window_bounds = array<i64: 1, 32>}, {pipeline_mode = #tpu.pipeline_mode<synchronous>, transform_indices = @transform_3, window_bounds = array<i64: 1, 32>}, {pipeline_mode = #tpu.pipeline_mode<synchronous>, transform_indices = @transform_4, window_bounds = array<i64: 2, 32, 96>}, {pipeline_mode = #tpu.pipeline_mode<synchronous>, transform_indices = @transform_5, window_bounds = array<i64: 2, 1, 96>}, {pipeline_mode = #tpu.pipeline_mode<synchronous>, transform_indices = @transform_6, window_bounds = array<i64: 2, 32, 32>}, {pipeline_mode = #tpu.pipeline_mode<synchronous>, transform_indices = @transform_7, window_bounds = array<i64: 2, 1, 32>}, {pipeline_mode = #tpu.pipeline_mode<synchronous>, transform_indices = @transform_8, window_bounds = array<i64: 2, 1, 32>}, {pipeline_mode = #tpu.pipeline_mode<synchronous>, transform_indices = @transform_9, window_bounds = array<i64: 2, 1, 32>}, {pipeline_mode = #tpu.pipeline_mode<synchronous>, transform_indices = @transform_10, window_bounds = array<i64: 2, 32, 64>}, {pipeline_mode = #tpu.pipeline_mode<synchronous>, transform_indices = @transform_11, window_bounds = array<i64: 2, 1, 64>}, {pipeline_mode = #tpu.pipeline_mode<synchronous>, transform_indices = @transform_12, window_bounds = array<i64: 2, 64, 32>}, {pipeline_mode = #tpu.pipeline_mode<synchronous>, transform_indices = @transform_13, window_bounds = array<i64: 2, 1, 32>}, {pipeline_mode = #tpu.pipeline_mode<synchronous>, transform_indices = @transform_14, window_bounds = array<i64: 2, 1, 32>}, {pipeline_mode = #tpu.pipeline_mode<synchronous>, transform_indices = @transform_15, window_bounds = array<i64: 2, 1, 32>}, {pipeline_mode = #tpu.pipeline_mode<synchronous>, transform_indices = @transform_16, window_bounds = array<i64: 32, 32>}, {pipeline_mode = #tpu.pipeline_mode<synchronous>, transform_indices = @transform_17, window_bounds = array<i64: 1, 32>}, {pipeline_mode = #tpu.pipeline_mode<synchronous>, transform_indices = @transform_18, window_bounds = array<i64: 1, 32>}, {pipeline_mode = #tpu.pipeline_mode<synchronous>, transform_indices = @transform_19, window_bounds = array<i64: 1, 1>}, {transform_indices = @transform_20, window_bounds = array<i64: 1, 1, 1>}]} {
    %c0 = arith.constant 0 : index
    %c0_0 = arith.constant 0 : index
    %c0_1 = arith.constant 0 : index
    %0 = vector.load %arg2[%c0, %c0_0, %c0_1] : memref<1x1x8xf32, #tpu.memory_space<vmem>>, vector<1x1x8xf32>
    %1 = vector.shape_cast %0 : vector<1x1x8xf32> to vector<1x8xf32>
    %cst = arith.constant 1.000000e+00 : f32
    %2 = vector.broadcast %cst : f32 to vector<1x8xf32>
    %3 = arith.subf %2, %1 : vector<1x8xf32>
    %cst_2 = arith.constant -1.000000e+04 : f32
    %4 = vector.broadcast %cst_2 : f32 to vector<1x8xf32>
    %5 = arith.mulf %3, %4 : vector<1x8xf32>
    %c0_3 = arith.constant 0 : index
    %c0_4 = arith.constant 0 : index
    %c0_5 = arith.constant 0 : index
    %6 = vector.load %arg1[%c0_3, %c0_4, %c0_5] : memref<1x8x32xf32, #tpu.memory_space<vmem>>, vector<1x8x32xf32>
    %7 = vector.shape_cast %6 : vector<1x8x32xf32> to vector<8x32xf32>
    %c0_6 = arith.constant 0 : index
    %c0_7 = arith.constant 0 : index
    %8 = vector.load %arg3[%c0_6, %c0_7] : memref<1x32xf32, #tpu.memory_space<vmem>>, vector<1x32xf32>
    %c0_8 = arith.constant 0 : index
    %c0_9 = arith.constant 0 : index
    %9 = vector.load %arg4[%c0_8, %c0_9] : memref<1x32xf32, #tpu.memory_space<vmem>>, vector<1x32xf32>
    %cst_10 = arith.constant dense<0.000000e+00> : vector<8xf32>
    %10 = vector.multi_reduction <add>, %7, %cst_10 [1] : vector<8x32xf32> to vector<8xf32>
    %11 = vector.shape_cast %10 : vector<8xf32> to vector<8x1xf32>
    %cst_11 = arith.constant 3.200000e+01 : f32
    %12 = vector.broadcast %cst_11 : f32 to vector<8x1xf32>
    %13 = arith.divf %11, %12 : vector<8x1xf32>
    %14 = vector.broadcast %13 : vector<8x1xf32> to vector<8x32xf32>
    %15 = arith.subf %7, %14 : vector<8x32xf32>
    %16 = arith.mulf %15, %15 : vector<8x32xf32>
    %cst_12 = arith.constant dense<0.000000e+00> : vector<8xf32>
    %17 = vector.multi_reduction <add>, %16, %cst_12 [1] : vector<8x32xf32> to vector<8xf32>
    %18 = vector.shape_cast %17 : vector<8xf32> to vector<8x1xf32>
    %cst_13 = arith.constant 3.200000e+01 : f32
    %19 = vector.broadcast %cst_13 : f32 to vector<8x1xf32>
    %20 = arith.divf %18, %19 : vector<8x1xf32>
    %21 = vector.broadcast %13 : vector<8x1xf32> to vector<8x32xf32>
    %22 = arith.subf %7, %21 : vector<8x32xf32>
    %cst_14 = arith.constant 9.99999996E-13 : f32
    %23 = vector.broadcast %cst_14 : f32 to vector<8x1xf32>
    %24 = arith.addf %20, %23 : vector<8x1xf32>
    %25 = math.rsqrt %24 : vector<8x1xf32>
    %26 = vector.broadcast %25 : vector<8x1xf32> to vector<8x32xf32>
    %27 = arith.mulf %22, %26 : vector<8x32xf32>
    %28 = vector.broadcast %8 : vector<1x32xf32> to vector<8x32xf32>
    %29 = arith.mulf %27, %28 : vector<8x32xf32>
    %30 = vector.broadcast %9 : vector<1x32xf32> to vector<8x32xf32>
    %31 = arith.addf %29, %30 : vector<8x32xf32>
    %c0_15 = arith.constant 0 : index
    %c0_16 = arith.constant 0 : index
    %c0_17 = arith.constant 0 : index
    %32 = vector.load %arg5[%c0_15, %c0_16, %c0_17] : memref<2x32x96xf32, #tpu.memory_space<vmem>>, vector<1x32x96xf32>
    %33 = vector.shape_cast %32 : vector<1x32x96xf32> to vector<32x96xf32>
    %cst_18 = arith.constant dense<0.000000e+00> : vector<8x96xf32>
    %34 = tpu.matmul %31, %33, %cst_18 {dimension_numbers = #tpu.dot_dimension_numbers<[1], [0], [0], [1], [0, 0, 1, 1], [], []>} : vector<8x32xf32>, vector<32x96xf32>, vector<8x96xf32> -> vector<8x96xf32>
    %c0_19 = arith.constant 0 : index
    %c0_20 = arith.constant 0 : index
    %c0_21 = arith.constant 0 : index
    %35 = vector.load %arg6[%c0_19, %c0_20, %c0_21] : memref<2x1x96xf32, #tpu.memory_space<vmem>>, vector<1x1x96xf32>
    %36 = vector.shape_cast %35 : vector<1x1x96xf32> to vector<1x96xf32>
    %37 = vector.broadcast %36 : vector<1x96xf32> to vector<8x96xf32>
    %38 = arith.addf %34, %37 : vector<8x96xf32>
    %c0_22 = arith.constant 0 : index
    %c0_23 = arith.constant 0 : index
    %c0_24 = arith.constant 0 : index
    %39 = vector.load %arg7[%c0_22, %c0_23, %c0_24] : memref<2x32x32xf32, #tpu.memory_space<vmem>>, vector<1x32x32xf32>
    %40 = vector.shape_cast %39 : vector<1x32x32xf32> to vector<32x32xf32>
    %cst_25 = arith.constant 0.000000e+00 : f32
    %41 = vector.broadcast %cst_25 : f32 to vector<8x32xf32>
    %42 = vector.extract_strided_slice %38 {offsets = [0, 0], sizes = [8, 8], strides = [1, 1]} : vector<8x96xf32> to vector<8x8xf32>
    %43 = vector.extract_strided_slice %38 {offsets = [0, 32], sizes = [8, 8], strides = [1, 1]} : vector<8x96xf32> to vector<8x8xf32>
    %44 = vector.extract_strided_slice %38 {offsets = [0, 64], sizes = [8, 8], strides = [1, 1]} : vector<8x96xf32> to vector<8x8xf32>
    %cst_26 = arith.constant dense<0.000000e+00> : vector<8x8xf32>
    %45 = tpu.matmul %42, %43, %cst_26 {dimension_numbers = #tpu.dot_dimension_numbers<[1], [1], [0], [0], [0, 0, 1, 0], [], []>} : vector<8x8xf32>, vector<8x8xf32>, vector<8x8xf32> -> vector<8x8xf32>
    %46 = vector.broadcast %5 : vector<1x8xf32> to vector<8x8xf32>
    %47 = arith.addf %45, %46 : vector<8x8xf32>
    %cst_27 = arith.constant dense<0xFF800000> : vector<8xf32>
    %48 = vector.multi_reduction <maximumf>, %47, %cst_27 [1] : vector<8x8xf32> to vector<8xf32>
    %49 = vector.shape_cast %48 : vector<8xf32> to vector<8x1xf32>
    %50 = vector.broadcast %49 : vector<8x1xf32> to vector<8x8xf32>
    %51 = arith.subf %47, %50 : vector<8x8xf32>
    %52 = math.exp %51 : vector<8x8xf32>
    %cst_28 = arith.constant dense<0.000000e+00> : vector<8xf32>
    %53 = vector.multi_reduction <add>, %52, %cst_28 [1] : vector<8x8xf32> to vector<8xf32>
    %54 = vector.shape_cast %53 : vector<8xf32> to vector<8x1xf32>
    %55 = vector.broadcast %54 : vector<8x1xf32> to vector<8x8xf32>
    %56 = arith.divf %52, %55 : vector<8x8xf32>
    %cst_29 = arith.constant dense<0.000000e+00> : vector<8x8xf32>
    %57 = tpu.matmul %56, %44, %cst_29 {dimension_numbers = #tpu.dot_dimension_numbers<[1], [0], [0], [1], [0, 0, 1, 1], [], []>} : vector<8x8xf32>, vector<8x8xf32>, vector<8x8xf32> -> vector<8x8xf32>
    %58 = vector.extract_strided_slice %40 {offsets = [0, 0], sizes = [8, 32], strides = [1, 1]} : vector<32x32xf32> to vector<8x32xf32>
    %cst_30 = arith.constant dense<0.000000e+00> : vector<8x32xf32>
    %59 = tpu.matmul %57, %58, %cst_30 {dimension_numbers = #tpu.dot_dimension_numbers<[1], [0], [0], [1], [0, 0, 1, 1], [], []>} : vector<8x8xf32>, vector<8x32xf32>, vector<8x32xf32> -> vector<8x32xf32>
    %60 = arith.addf %41, %59 : vector<8x32xf32>
    %61 = vector.extract_strided_slice %38 {offsets = [0, 8], sizes = [8, 8], strides = [1, 1]} : vector<8x96xf32> to vector<8x8xf32>
    %62 = vector.extract_strided_slice %38 {offsets = [0, 40], sizes = [8, 8], strides = [1, 1]} : vector<8x96xf32> to vector<8x8xf32>
    %63 = vector.extract_strided_slice %38 {offsets = [0, 72], sizes = [8, 8], strides = [1, 1]} : vector<8x96xf32> to vector<8x8xf32>
    %cst_31 = arith.constant dense<0.000000e+00> : vector<8x8xf32>
    %64 = tpu.matmul %61, %62, %cst_31 {dimension_numbers = #tpu.dot_dimension_numbers<[1], [1], [0], [0], [0, 0, 1, 0], [], []>} : vector<8x8xf32>, vector<8x8xf32>, vector<8x8xf32> -> vector<8x8xf32>
    %65 = vector.broadcast %5 : vector<1x8xf32> to vector<8x8xf32>
    %66 = arith.addf %64, %65 : vector<8x8xf32>
    %cst_32 = arith.constant dense<0xFF800000> : vector<8xf32>
    %67 = vector.multi_reduction <maximumf>, %66, %cst_32 [1] : vector<8x8xf32> to vector<8xf32>
    %68 = vector.shape_cast %67 : vector<8xf32> to vector<8x1xf32>
    %69 = vector.broadcast %68 : vector<8x1xf32> to vector<8x8xf32>
    %70 = arith.subf %66, %69 : vector<8x8xf32>
    %71 = math.exp %70 : vector<8x8xf32>
    %cst_33 = arith.constant dense<0.000000e+00> : vector<8xf32>
    %72 = vector.multi_reduction <add>, %71, %cst_33 [1] : vector<8x8xf32> to vector<8xf32>
    %73 = vector.shape_cast %72 : vector<8xf32> to vector<8x1xf32>
    %74 = vector.broadcast %73 : vector<8x1xf32> to vector<8x8xf32>
    %75 = arith.divf %71, %74 : vector<8x8xf32>
    %cst_34 = arith.constant dense<0.000000e+00> : vector<8x8xf32>
    %76 = tpu.matmul %75, %63, %cst_34 {dimension_numbers = #tpu.dot_dimension_numbers<[1], [0], [0], [1], [0, 0, 1, 1], [], []>} : vector<8x8xf32>, vector<8x8xf32>, vector<8x8xf32> -> vector<8x8xf32>
    %77 = vector.extract_strided_slice %40 {offsets = [8, 0], sizes = [8, 32], strides = [1, 1]} : vector<32x32xf32> to vector<8x32xf32>
    %cst_35 = arith.constant dense<0.000000e+00> : vector<8x32xf32>
    %78 = tpu.matmul %76, %77, %cst_35 {dimension_numbers = #tpu.dot_dimension_numbers<[1], [0], [0], [1], [0, 0, 1, 1], [], []>} : vector<8x8xf32>, vector<8x32xf32>, vector<8x32xf32> -> vector<8x32xf32>
    %79 = arith.addf %60, %78 : vector<8x32xf32>
    %80 = vector.extract_strided_slice %38 {offsets = [0, 16], sizes = [8, 8], strides = [1, 1]} : vector<8x96xf32> to vector<8x8xf32>
    %81 = vector.extract_strided_slice %38 {offsets = [0, 48], sizes = [8, 8], strides = [1, 1]} : vector<8x96xf32> to vector<8x8xf32>
    %82 = vector.extract_strided_slice %38 {offsets = [0, 80], sizes = [8, 8], strides = [1, 1]} : vector<8x96xf32> to vector<8x8xf32>
    %cst_36 = arith.constant dense<0.000000e+00> : vector<8x8xf32>
    %83 = tpu.matmul %80, %81, %cst_36 {dimension_numbers = #tpu.dot_dimension_numbers<[1], [1], [0], [0], [0, 0, 1, 0], [], []>} : vector<8x8xf32>, vector<8x8xf32>, vector<8x8xf32> -> vector<8x8xf32>
    %84 = vector.broadcast %5 : vector<1x8xf32> to vector<8x8xf32>
    %85 = arith.addf %83, %84 : vector<8x8xf32>
    %cst_37 = arith.constant dense<0xFF800000> : vector<8xf32>
    %86 = vector.multi_reduction <maximumf>, %85, %cst_37 [1] : vector<8x8xf32> to vector<8xf32>
    %87 = vector.shape_cast %86 : vector<8xf32> to vector<8x1xf32>
    %88 = vector.broadcast %87 : vector<8x1xf32> to vector<8x8xf32>
    %89 = arith.subf %85, %88 : vector<8x8xf32>
    %90 = math.exp %89 : vector<8x8xf32>
    %cst_38 = arith.constant dense<0.000000e+00> : vector<8xf32>
    %91 = vector.multi_reduction <add>, %90, %cst_38 [1] : vector<8x8xf32> to vector<8xf32>
    %92 = vector.shape_cast %91 : vector<8xf32> to vector<8x1xf32>
    %93 = vector.broadcast %92 : vector<8x1xf32> to vector<8x8xf32>
    %94 = arith.divf %90, %93 : vector<8x8xf32>
    %cst_39 = arith.constant dense<0.000000e+00> : vector<8x8xf32>
    %95 = tpu.matmul %94, %82, %cst_39 {dimension_numbers = #tpu.dot_dimension_numbers<[1], [0], [0], [1], [0, 0, 1, 1], [], []>} : vector<8x8xf32>, vector<8x8xf32>, vector<8x8xf32> -> vector<8x8xf32>
    %96 = vector.extract_strided_slice %40 {offsets = [16, 0], sizes = [8, 32], strides = [1, 1]} : vector<32x32xf32> to vector<8x32xf32>
    %cst_40 = arith.constant dense<0.000000e+00> : vector<8x32xf32>
    %97 = tpu.matmul %95, %96, %cst_40 {dimension_numbers = #tpu.dot_dimension_numbers<[1], [0], [0], [1], [0, 0, 1, 1], [], []>} : vector<8x8xf32>, vector<8x32xf32>, vector<8x32xf32> -> vector<8x32xf32>
    %98 = arith.addf %79, %97 : vector<8x32xf32>
    %99 = vector.extract_strided_slice %38 {offsets = [0, 24], sizes = [8, 8], strides = [1, 1]} : vector<8x96xf32> to vector<8x8xf32>
    %100 = vector.extract_strided_slice %38 {offsets = [0, 56], sizes = [8, 8], strides = [1, 1]} : vector<8x96xf32> to vector<8x8xf32>
    %101 = vector.extract_strided_slice %38 {offsets = [0, 88], sizes = [8, 8], strides = [1, 1]} : vector<8x96xf32> to vector<8x8xf32>
    %cst_41 = arith.constant dense<0.000000e+00> : vector<8x8xf32>
    %102 = tpu.matmul %99, %100, %cst_41 {dimension_numbers = #tpu.dot_dimension_numbers<[1], [1], [0], [0], [0, 0, 1, 0], [], []>} : vector<8x8xf32>, vector<8x8xf32>, vector<8x8xf32> -> vector<8x8xf32>
    %103 = vector.broadcast %5 : vector<1x8xf32> to vector<8x8xf32>
    %104 = arith.addf %102, %103 : vector<8x8xf32>
    %cst_42 = arith.constant dense<0xFF800000> : vector<8xf32>
    %105 = vector.multi_reduction <maximumf>, %104, %cst_42 [1] : vector<8x8xf32> to vector<8xf32>
    %106 = vector.shape_cast %105 : vector<8xf32> to vector<8x1xf32>
    %107 = vector.broadcast %106 : vector<8x1xf32> to vector<8x8xf32>
    %108 = arith.subf %104, %107 : vector<8x8xf32>
    %109 = math.exp %108 : vector<8x8xf32>
    %cst_43 = arith.constant dense<0.000000e+00> : vector<8xf32>
    %110 = vector.multi_reduction <add>, %109, %cst_43 [1] : vector<8x8xf32> to vector<8xf32>
    %111 = vector.shape_cast %110 : vector<8xf32> to vector<8x1xf32>
    %112 = vector.broadcast %111 : vector<8x1xf32> to vector<8x8xf32>
    %113 = arith.divf %109, %112 : vector<8x8xf32>
    %cst_44 = arith.constant dense<0.000000e+00> : vector<8x8xf32>
    %114 = tpu.matmul %113, %101, %cst_44 {dimension_numbers = #tpu.dot_dimension_numbers<[1], [0], [0], [1], [0, 0, 1, 1], [], []>} : vector<8x8xf32>, vector<8x8xf32>, vector<8x8xf32> -> vector<8x8xf32>
    %115 = vector.extract_strided_slice %40 {offsets = [24, 0], sizes = [8, 32], strides = [1, 1]} : vector<32x32xf32> to vector<8x32xf32>
    %cst_45 = arith.constant dense<0.000000e+00> : vector<8x32xf32>
    %116 = tpu.matmul %114, %115, %cst_45 {dimension_numbers = #tpu.dot_dimension_numbers<[1], [0], [0], [1], [0, 0, 1, 1], [], []>} : vector<8x8xf32>, vector<8x32xf32>, vector<8x32xf32> -> vector<8x32xf32>
    %117 = arith.addf %98, %116 : vector<8x32xf32>
    %c0_46 = arith.constant 0 : index
    %c0_47 = arith.constant 0 : index
    %c0_48 = arith.constant 0 : index
    %118 = vector.load %arg8[%c0_46, %c0_47, %c0_48] : memref<2x1x32xf32, #tpu.memory_space<vmem>>, vector<1x1x32xf32>
    %119 = vector.shape_cast %118 : vector<1x1x32xf32> to vector<1x32xf32>
    %120 = vector.broadcast %119 : vector<1x32xf32> to vector<8x32xf32>
    %121 = arith.addf %117, %120 : vector<8x32xf32>
    %122 = arith.addf %121, %31 : vector<8x32xf32>
    %c0_49 = arith.constant 0 : index
    %c0_50 = arith.constant 0 : index
    %c0_51 = arith.constant 0 : index
    %123 = vector.load %arg9[%c0_49, %c0_50, %c0_51] : memref<2x1x32xf32, #tpu.memory_space<vmem>>, vector<1x1x32xf32>
    %124 = vector.shape_cast %123 : vector<1x1x32xf32> to vector<1x32xf32>
    %c0_52 = arith.constant 0 : index
    %c0_53 = arith.constant 0 : index
    %c0_54 = arith.constant 0 : index
    %125 = vector.load %arg10[%c0_52, %c0_53, %c0_54] : memref<2x1x32xf32, #tpu.memory_space<vmem>>, vector<1x1x32xf32>
    %126 = vector.shape_cast %125 : vector<1x1x32xf32> to vector<1x32xf32>
    %cst_55 = arith.constant dense<0.000000e+00> : vector<8xf32>
    %127 = vector.multi_reduction <add>, %122, %cst_55 [1] : vector<8x32xf32> to vector<8xf32>
    %128 = vector.shape_cast %127 : vector<8xf32> to vector<8x1xf32>
    %cst_56 = arith.constant 3.200000e+01 : f32
    %129 = vector.broadcast %cst_56 : f32 to vector<8x1xf32>
    %130 = arith.divf %128, %129 : vector<8x1xf32>
    %131 = vector.broadcast %130 : vector<8x1xf32> to vector<8x32xf32>
    %132 = arith.subf %122, %131 : vector<8x32xf32>
    %133 = arith.mulf %132, %132 : vector<8x32xf32>
    %cst_57 = arith.constant dense<0.000000e+00> : vector<8xf32>
    %134 = vector.multi_reduction <add>, %133, %cst_57 [1] : vector<8x32xf32> to vector<8xf32>
    %135 = vector.shape_cast %134 : vector<8xf32> to vector<8x1xf32>
    %cst_58 = arith.constant 3.200000e+01 : f32
    %136 = vector.broadcast %cst_58 : f32 to vector<8x1xf32>
    %137 = arith.divf %135, %136 : vector<8x1xf32>
    %138 = vector.broadcast %130 : vector<8x1xf32> to vector<8x32xf32>
    %139 = arith.subf %122, %138 : vector<8x32xf32>
    %cst_59 = arith.constant 9.99999996E-13 : f32
    %140 = vector.broadcast %cst_59 : f32 to vector<8x1xf32>
    %141 = arith.addf %137, %140 : vector<8x1xf32>
    %142 = math.rsqrt %141 : vector<8x1xf32>
    %143 = vector.broadcast %142 : vector<8x1xf32> to vector<8x32xf32>
    %144 = arith.mulf %139, %143 : vector<8x32xf32>
    %145 = vector.broadcast %124 : vector<1x32xf32> to vector<8x32xf32>
    %146 = arith.mulf %144, %145 : vector<8x32xf32>
    %147 = vector.broadcast %126 : vector<1x32xf32> to vector<8x32xf32>
    %148 = arith.addf %146, %147 : vector<8x32xf32>
    %c0_60 = arith.constant 0 : index
    %c0_61 = arith.constant 0 : index
    %c0_62 = arith.constant 0 : index
    %149 = vector.load %arg11[%c0_60, %c0_61, %c0_62] : memref<2x32x64xf32, #tpu.memory_space<vmem>>, vector<1x32x64xf32>
    %150 = vector.shape_cast %149 : vector<1x32x64xf32> to vector<32x64xf32>
    %cst_63 = arith.constant dense<0.000000e+00> : vector<8x64xf32>
    %151 = tpu.matmul %148, %150, %cst_63 {dimension_numbers = #tpu.dot_dimension_numbers<[1], [0], [0], [1], [0, 0, 1, 1], [], []>} : vector<8x32xf32>, vector<32x64xf32>, vector<8x64xf32> -> vector<8x64xf32>
    %c0_64 = arith.constant 0 : index
    %c0_65 = arith.constant 0 : index
    %c0_66 = arith.constant 0 : index
    %152 = vector.load %arg12[%c0_64, %c0_65, %c0_66] : memref<2x1x64xf32, #tpu.memory_space<vmem>>, vector<1x1x64xf32>
    %153 = vector.shape_cast %152 : vector<1x1x64xf32> to vector<1x64xf32>
    %154 = vector.broadcast %153 : vector<1x64xf32> to vector<8x64xf32>
    %155 = arith.addf %151, %154 : vector<8x64xf32>
    %cst_67 = arith.constant 5.000000e-01 : f32
    %156 = vector.broadcast %cst_67 : f32 to vector<8x64xf32>
    %157 = arith.mulf %156, %155 : vector<8x64xf32>
    %cst_68 = arith.constant 4.471500e-02 : f32
    %158 = vector.broadcast %cst_68 : f32 to vector<8x64xf32>
    %159 = arith.mulf %158, %155 : vector<8x64xf32>
    %160 = arith.mulf %159, %155 : vector<8x64xf32>
    %161 = arith.mulf %160, %155 : vector<8x64xf32>
    %162 = arith.addf %155, %161 : vector<8x64xf32>
    %cst_69 = arith.constant 0.797884583 : f32
    %163 = vector.broadcast %cst_69 : f32 to vector<8x64xf32>
    %164 = arith.mulf %163, %162 : vector<8x64xf32>
    %165 = math.tanh %164 : vector<8x64xf32>
    %cst_70 = arith.constant 1.000000e+00 : f32
    %166 = vector.broadcast %cst_70 : f32 to vector<8x64xf32>
    %167 = arith.addf %166, %165 : vector<8x64xf32>
    %168 = arith.mulf %157, %167 : vector<8x64xf32>
    %c0_71 = arith.constant 0 : index
    %c0_72 = arith.constant 0 : index
    %c0_73 = arith.constant 0 : index
    %169 = vector.load %arg13[%c0_71, %c0_72, %c0_73] : memref<2x64x32xf32, #tpu.memory_space<vmem>>, vector<1x64x32xf32>
    %170 = vector.shape_cast %169 : vector<1x64x32xf32> to vector<64x32xf32>
    %cst_74 = arith.constant dense<0.000000e+00> : vector<8x32xf32>
    %171 = tpu.matmul %168, %170, %cst_74 {dimension_numbers = #tpu.dot_dimension_numbers<[1], [0], [0], [1], [0, 0, 1, 1], [], []>} : vector<8x64xf32>, vector<64x32xf32>, vector<8x32xf32> -> vector<8x32xf32>
    %c0_75 = arith.constant 0 : index
    %c0_76 = arith.constant 0 : index
    %c0_77 = arith.constant 0 : index
    %172 = vector.load %arg14[%c0_75, %c0_76, %c0_77] : memref<2x1x32xf32, #tpu.memory_space<vmem>>, vector<1x1x32xf32>
    %173 = vector.shape_cast %172 : vector<1x1x32xf32> to vector<1x32xf32>
    %174 = vector.broadcast %173 : vector<1x32xf32> to vector<8x32xf32>
    %175 = arith.addf %171, %174 : vector<8x32xf32>
    %176 = arith.addf %175, %148 : vector<8x32xf32>
    %c0_78 = arith.constant 0 : index
    %c0_79 = arith.constant 0 : index
    %c0_80 = arith.constant 0 : index
    %177 = vector.load %arg15[%c0_78, %c0_79, %c0_80] : memref<2x1x32xf32, #tpu.memory_space<vmem>>, vector<1x1x32xf32>
    %178 = vector.shape_cast %177 : vector<1x1x32xf32> to vector<1x32xf32>
    %c0_81 = arith.constant 0 : index
    %c0_82 = arith.constant 0 : index
    %c0_83 = arith.constant 0 : index
    %179 = vector.load %arg16[%c0_81, %c0_82, %c0_83] : memref<2x1x32xf32, #tpu.memory_space<vmem>>, vector<1x1x32xf32>
    %180 = vector.shape_cast %179 : vector<1x1x32xf32> to vector<1x32xf32>
    %cst_84 = arith.constant dense<0.000000e+00> : vector<8xf32>
    %181 = vector.multi_reduction <add>, %176, %cst_84 [1] : vector<8x32xf32> to vector<8xf32>
    %182 = vector.shape_cast %181 : vector<8xf32> to vector<8x1xf32>
    %cst_85 = arith.constant 3.200000e+01 : f32
    %183 = vector.broadcast %cst_85 : f32 to vector<8x1xf32>
    %184 = arith.divf %182, %183 : vector<8x1xf32>
    %185 = vector.broadcast %184 : vector<8x1xf32> to vector<8x32xf32>
    %186 = arith.subf %176, %185 : vector<8x32xf32>
    %187 = arith.mulf %186, %186 : vector<8x32xf32>
    %cst_86 = arith.constant dense<0.000000e+00> : vector<8xf32>
    %188 = vector.multi_reduction <add>, %187, %cst_86 [1] : vector<8x32xf32> to vector<8xf32>
    %189 = vector.shape_cast %188 : vector<8xf32> to vector<8x1xf32>
    %cst_87 = arith.constant 3.200000e+01 : f32
    %190 = vector.broadcast %cst_87 : f32 to vector<8x1xf32>
    %191 = arith.divf %189, %190 : vector<8x1xf32>
    %192 = vector.broadcast %184 : vector<8x1xf32> to vector<8x32xf32>
    %193 = arith.subf %176, %192 : vector<8x32xf32>
    %cst_88 = arith.constant 9.99999996E-13 : f32
    %194 = vector.broadcast %cst_88 : f32 to vector<8x1xf32>
    %195 = arith.addf %191, %194 : vector<8x1xf32>
    %196 = math.rsqrt %195 : vector<8x1xf32>
    %197 = vector.broadcast %196 : vector<8x1xf32> to vector<8x32xf32>
    %198 = arith.mulf %193, %197 : vector<8x32xf32>
    %199 = vector.broadcast %178 : vector<1x32xf32> to vector<8x32xf32>
    %200 = arith.mulf %198, %199 : vector<8x32xf32>
    %201 = vector.broadcast %180 : vector<1x32xf32> to vector<8x32xf32>
    %202 = arith.addf %200, %201 : vector<8x32xf32>
    %c1 = arith.constant 1 : index
    %c0_89 = arith.constant 0 : index
    %c0_90 = arith.constant 0 : index
    %203 = vector.load %arg5[%c1, %c0_89, %c0_90] : memref<2x32x96xf32, #tpu.memory_space<vmem>>, vector<1x32x96xf32>
    %204 = vector.shape_cast %203 : vector<1x32x96xf32> to vector<32x96xf32>
    %cst_91 = arith.constant dense<0.000000e+00> : vector<8x96xf32>
    %205 = tpu.matmul %202, %204, %cst_91 {dimension_numbers = #tpu.dot_dimension_numbers<[1], [0], [0], [1], [0, 0, 1, 1], [], []>} : vector<8x32xf32>, vector<32x96xf32>, vector<8x96xf32> -> vector<8x96xf32>
    %c1_92 = arith.constant 1 : index
    %c0_93 = arith.constant 0 : index
    %c0_94 = arith.constant 0 : index
    %206 = vector.load %arg6[%c1_92, %c0_93, %c0_94] : memref<2x1x96xf32, #tpu.memory_space<vmem>>, vector<1x1x96xf32>
    %207 = vector.shape_cast %206 : vector<1x1x96xf32> to vector<1x96xf32>
    %208 = vector.broadcast %207 : vector<1x96xf32> to vector<8x96xf32>
    %209 = arith.addf %205, %208 : vector<8x96xf32>
    %c1_95 = arith.constant 1 : index
    %c0_96 = arith.constant 0 : index
    %c0_97 = arith.constant 0 : index
    %210 = vector.load %arg7[%c1_95, %c0_96, %c0_97] : memref<2x32x32xf32, #tpu.memory_space<vmem>>, vector<1x32x32xf32>
    %211 = vector.shape_cast %210 : vector<1x32x32xf32> to vector<32x32xf32>
    %cst_98 = arith.constant 0.000000e+00 : f32
    %212 = vector.broadcast %cst_98 : f32 to vector<8x32xf32>
    %213 = vector.extract_strided_slice %209 {offsets = [0, 0], sizes = [8, 8], strides = [1, 1]} : vector<8x96xf32> to vector<8x8xf32>
    %214 = vector.extract_strided_slice %209 {offsets = [0, 32], sizes = [8, 8], strides = [1, 1]} : vector<8x96xf32> to vector<8x8xf32>
    %215 = vector.extract_strided_slice %209 {offsets = [0, 64], sizes = [8, 8], strides = [1, 1]} : vector<8x96xf32> to vector<8x8xf32>
    %cst_99 = arith.constant dense<0.000000e+00> : vector<8x8xf32>
    %216 = tpu.matmul %213, %214, %cst_99 {dimension_numbers = #tpu.dot_dimension_numbers<[1], [1], [0], [0], [0, 0, 1, 0], [], []>} : vector<8x8xf32>, vector<8x8xf32>, vector<8x8xf32> -> vector<8x8xf32>
    %217 = vector.broadcast %5 : vector<1x8xf32> to vector<8x8xf32>
    %218 = arith.addf %216, %217 : vector<8x8xf32>
    %cst_100 = arith.constant dense<0xFF800000> : vector<8xf32>
    %219 = vector.multi_reduction <maximumf>, %218, %cst_100 [1] : vector<8x8xf32> to vector<8xf32>
    %220 = vector.shape_cast %219 : vector<8xf32> to vector<8x1xf32>
    %221 = vector.broadcast %220 : vector<8x1xf32> to vector<8x8xf32>
    %222 = arith.subf %218, %221 : vector<8x8xf32>
    %223 = math.exp %222 : vector<8x8xf32>
    %cst_101 = arith.constant dense<0.000000e+00> : vector<8xf32>
    %224 = vector.multi_reduction <add>, %223, %cst_101 [1] : vector<8x8xf32> to vector<8xf32>
    %225 = vector.shape_cast %224 : vector<8xf32> to vector<8x1xf32>
    %226 = vector.broadcast %225 : vector<8x1xf32> to vector<8x8xf32>
    %227 = arith.divf %223, %226 : vector<8x8xf32>
    %cst_102 = arith.constant dense<0.000000e+00> : vector<8x8xf32>
    %228 = tpu.matmul %227, %215, %cst_102 {dimension_numbers = #tpu.dot_dimension_numbers<[1], [0], [0], [1], [0, 0, 1, 1], [], []>} : vector<8x8xf32>, vector<8x8xf32>, vector<8x8xf32> -> vector<8x8xf32>
    %229 = vector.extract_strided_slice %211 {offsets = [0, 0], sizes = [8, 32], strides = [1, 1]} : vector<32x32xf32> to vector<8x32xf32>
    %cst_103 = arith.constant dense<0.000000e+00> : vector<8x32xf32>
    %230 = tpu.matmul %228, %229, %cst_103 {dimension_numbers = #tpu.dot_dimension_numbers<[1], [0], [0], [1], [0, 0, 1, 1], [], []>} : vector<8x8xf32>, vector<8x32xf32>, vector<8x32xf32> -> vector<8x32xf32>
    %231 = arith.addf %212, %230 : vector<8x32xf32>
    %232 = vector.extract_strided_slice %209 {offsets = [0, 8], sizes = [8, 8], strides = [1, 1]} : vector<8x96xf32> to vector<8x8xf32>
    %233 = vector.extract_strided_slice %209 {offsets = [0, 40], sizes = [8, 8], strides = [1, 1]} : vector<8x96xf32> to vector<8x8xf32>
    %234 = vector.extract_strided_slice %209 {offsets = [0, 72], sizes = [8, 8], strides = [1, 1]} : vector<8x96xf32> to vector<8x8xf32>
    %cst_104 = arith.constant dense<0.000000e+00> : vector<8x8xf32>
    %235 = tpu.matmul %232, %233, %cst_104 {dimension_numbers = #tpu.dot_dimension_numbers<[1], [1], [0], [0], [0, 0, 1, 0], [], []>} : vector<8x8xf32>, vector<8x8xf32>, vector<8x8xf32> -> vector<8x8xf32>
    %236 = vector.broadcast %5 : vector<1x8xf32> to vector<8x8xf32>
    %237 = arith.addf %235, %236 : vector<8x8xf32>
    %cst_105 = arith.constant dense<0xFF800000> : vector<8xf32>
    %238 = vector.multi_reduction <maximumf>, %237, %cst_105 [1] : vector<8x8xf32> to vector<8xf32>
    %239 = vector.shape_cast %238 : vector<8xf32> to vector<8x1xf32>
    %240 = vector.broadcast %239 : vector<8x1xf32> to vector<8x8xf32>
    %241 = arith.subf %237, %240 : vector<8x8xf32>
    %242 = math.exp %241 : vector<8x8xf32>
    %cst_106 = arith.constant dense<0.000000e+00> : vector<8xf32>
    %243 = vector.multi_reduction <add>, %242, %cst_106 [1] : vector<8x8xf32> to vector<8xf32>
    %244 = vector.shape_cast %243 : vector<8xf32> to vector<8x1xf32>
    %245 = vector.broadcast %244 : vector<8x1xf32> to vector<8x8xf32>
    %246 = arith.divf %242, %245 : vector<8x8xf32>
    %cst_107 = arith.constant dense<0.000000e+00> : vector<8x8xf32>
    %247 = tpu.matmul %246, %234, %cst_107 {dimension_numbers = #tpu.dot_dimension_numbers<[1], [0], [0], [1], [0, 0, 1, 1], [], []>} : vector<8x8xf32>, vector<8x8xf32>, vector<8x8xf32> -> vector<8x8xf32>
    %248 = vector.extract_strided_slice %211 {offsets = [8, 0], sizes = [8, 32], strides = [1, 1]} : vector<32x32xf32> to vector<8x32xf32>
    %cst_108 = arith.constant dense<0.000000e+00> : vector<8x32xf32>
    %249 = tpu.matmul %247, %248, %cst_108 {dimension_numbers = #tpu.dot_dimension_numbers<[1], [0], [0], [1], [0, 0, 1, 1], [], []>} : vector<8x8xf32>, vector<8x32xf32>, vector<8x32xf32> -> vector<8x32xf32>
    %250 = arith.addf %231, %249 : vector<8x32xf32>
    %251 = vector.extract_strided_slice %209 {offsets = [0, 16], sizes = [8, 8], strides = [1, 1]} : vector<8x96xf32> to vector<8x8xf32>
    %252 = vector.extract_strided_slice %209 {offsets = [0, 48], sizes = [8, 8], strides = [1, 1]} : vector<8x96xf32> to vector<8x8xf32>
    %253 = vector.extract_strided_slice %209 {offsets = [0, 80], sizes = [8, 8], strides = [1, 1]} : vector<8x96xf32> to vector<8x8xf32>
    %cst_109 = arith.constant dense<0.000000e+00> : vector<8x8xf32>
    %254 = tpu.matmul %251, %252, %cst_109 {dimension_numbers = #tpu.dot_dimension_numbers<[1], [1], [0], [0], [0, 0, 1, 0], [], []>} : vector<8x8xf32>, vector<8x8xf32>, vector<8x8xf32> -> vector<8x8xf32>
    %255 = vector.broadcast %5 : vector<1x8xf32> to vector<8x8xf32>
    %256 = arith.addf %254, %255 : vector<8x8xf32>
    %cst_110 = arith.constant dense<0xFF800000> : vector<8xf32>
    %257 = vector.multi_reduction <maximumf>, %256, %cst_110 [1] : vector<8x8xf32> to vector<8xf32>
    %258 = vector.shape_cast %257 : vector<8xf32> to vector<8x1xf32>
    %259 = vector.broadcast %258 : vector<8x1xf32> to vector<8x8xf32>
    %260 = arith.subf %256, %259 : vector<8x8xf32>
    %261 = math.exp %260 : vector<8x8xf32>
    %cst_111 = arith.constant dense<0.000000e+00> : vector<8xf32>
    %262 = vector.multi_reduction <add>, %261, %cst_111 [1] : vector<8x8xf32> to vector<8xf32>
    %263 = vector.shape_cast %262 : vector<8xf32> to vector<8x1xf32>
    %264 = vector.broadcast %263 : vector<8x1xf32> to vector<8x8xf32>
    %265 = arith.divf %261, %264 : vector<8x8xf32>
    %cst_112 = arith.constant dense<0.000000e+00> : vector<8x8xf32>
    %266 = tpu.matmul %265, %253, %cst_112 {dimension_numbers = #tpu.dot_dimension_numbers<[1], [0], [0], [1], [0, 0, 1, 1], [], []>} : vector<8x8xf32>, vector<8x8xf32>, vector<8x8xf32> -> vector<8x8xf32>
    %267 = vector.extract_strided_slice %211 {offsets = [16, 0], sizes = [8, 32], strides = [1, 1]} : vector<32x32xf32> to vector<8x32xf32>
    %cst_113 = arith.constant dense<0.000000e+00> : vector<8x32xf32>
    %268 = tpu.matmul %266, %267, %cst_113 {dimension_numbers = #tpu.dot_dimension_numbers<[1], [0], [0], [1], [0, 0, 1, 1], [], []>} : vector<8x8xf32>, vector<8x32xf32>, vector<8x32xf32> -> vector<8x32xf32>
    %269 = arith.addf %250, %268 : vector<8x32xf32>
    %270 = vector.extract_strided_slice %209 {offsets = [0, 24], sizes = [8, 8], strides = [1, 1]} : vector<8x96xf32> to vector<8x8xf32>
    %271 = vector.extract_strided_slice %209 {offsets = [0, 56], sizes = [8, 8], strides = [1, 1]} : vector<8x96xf32> to vector<8x8xf32>
    %272 = vector.extract_strided_slice %209 {offsets = [0, 88], sizes = [8, 8], strides = [1, 1]} : vector<8x96xf32> to vector<8x8xf32>
    %cst_114 = arith.constant dense<0.000000e+00> : vector<8x8xf32>
    %273 = tpu.matmul %270, %271, %cst_114 {dimension_numbers = #tpu.dot_dimension_numbers<[1], [1], [0], [0], [0, 0, 1, 0], [], []>} : vector<8x8xf32>, vector<8x8xf32>, vector<8x8xf32> -> vector<8x8xf32>
    %274 = vector.broadcast %5 : vector<1x8xf32> to vector<8x8xf32>
    %275 = arith.addf %273, %274 : vector<8x8xf32>
    %cst_115 = arith.constant dense<0xFF800000> : vector<8xf32>
    %276 = vector.multi_reduction <maximumf>, %275, %cst_115 [1] : vector<8x8xf32> to vector<8xf32>
    %277 = vector.shape_cast %276 : vector<8xf32> to vector<8x1xf32>
    %278 = vector.broadcast %277 : vector<8x1xf32> to vector<8x8xf32>
    %279 = arith.subf %275, %278 : vector<8x8xf32>
    %280 = math.exp %279 : vector<8x8xf32>
    %cst_116 = arith.constant dense<0.000000e+00> : vector<8xf32>
    %281 = vector.multi_reduction <add>, %280, %cst_116 [1] : vector<8x8xf32> to vector<8xf32>
    %282 = vector.shape_cast %281 : vector<8xf32> to vector<8x1xf32>
    %283 = vector.broadcast %282 : vector<8x1xf32> to vector<8x8xf32>
    %284 = arith.divf %280, %283 : vector<8x8xf32>
    %cst_117 = arith.constant dense<0.000000e+00> : vector<8x8xf32>
    %285 = tpu.matmul %284, %272, %cst_117 {dimension_numbers = #tpu.dot_dimension_numbers<[1], [0], [0], [1], [0, 0, 1, 1], [], []>} : vector<8x8xf32>, vector<8x8xf32>, vector<8x8xf32> -> vector<8x8xf32>
    %286 = vector.extract_strided_slice %211 {offsets = [24, 0], sizes = [8, 32], strides = [1, 1]} : vector<32x32xf32> to vector<8x32xf32>
    %cst_118 = arith.constant dense<0.000000e+00> : vector<8x32xf32>
    %287 = tpu.matmul %285, %286, %cst_118 {dimension_numbers = #tpu.dot_dimension_numbers<[1], [0], [0], [1], [0, 0, 1, 1], [], []>} : vector<8x8xf32>, vector<8x32xf32>, vector<8x32xf32> -> vector<8x32xf32>
    %288 = arith.addf %269, %287 : vector<8x32xf32>
    %c1_119 = arith.constant 1 : index
    %c0_120 = arith.constant 0 : index
    %c0_121 = arith.constant 0 : index
    %289 = vector.load %arg8[%c1_119, %c0_120, %c0_121] : memref<2x1x32xf32, #tpu.memory_space<vmem>>, vector<1x1x32xf32>
    %290 = vector.shape_cast %289 : vector<1x1x32xf32> to vector<1x32xf32>
    %291 = vector.broadcast %290 : vector<1x32xf32> to vector<8x32xf32>
    %292 = arith.addf %288, %291 : vector<8x32xf32>
    %293 = arith.addf %292, %202 : vector<8x32xf32>
    %c1_122 = arith.constant 1 : index
    %c0_123 = arith.constant 0 : index
    %c0_124 = arith.constant 0 : index
    %294 = vector.load %arg9[%c1_122, %c0_123, %c0_124] : memref<2x1x32xf32, #tpu.memory_space<vmem>>, vector<1x1x32xf32>
    %295 = vector.shape_cast %294 : vector<1x1x32xf32> to vector<1x32xf32>
    %c1_125 = arith.constant 1 : index
    %c0_126 = arith.constant 0 : index
    %c0_127 = arith.constant 0 : index
    %296 = vector.load %arg10[%c1_125, %c0_126, %c0_127] : memref<2x1x32xf32, #tpu.memory_space<vmem>>, vector<1x1x32xf32>
    %297 = vector.shape_cast %296 : vector<1x1x32xf32> to vector<1x32xf32>
    %cst_128 = arith.constant dense<0.000000e+00> : vector<8xf32>
    %298 = vector.multi_reduction <add>, %293, %cst_128 [1] : vector<8x32xf32> to vector<8xf32>
    %299 = vector.shape_cast %298 : vector<8xf32> to vector<8x1xf32>
    %cst_129 = arith.constant 3.200000e+01 : f32
    %300 = vector.broadcast %cst_129 : f32 to vector<8x1xf32>
    %301 = arith.divf %299, %300 : vector<8x1xf32>
    %302 = vector.broadcast %301 : vector<8x1xf32> to vector<8x32xf32>
    %303 = arith.subf %293, %302 : vector<8x32xf32>
    %304 = arith.mulf %303, %303 : vector<8x32xf32>
    %cst_130 = arith.constant dense<0.000000e+00> : vector<8xf32>
    %305 = vector.multi_reduction <add>, %304, %cst_130 [1] : vector<8x32xf32> to vector<8xf32>
    %306 = vector.shape_cast %305 : vector<8xf32> to vector<8x1xf32>
    %cst_131 = arith.constant 3.200000e+01 : f32
    %307 = vector.broadcast %cst_131 : f32 to vector<8x1xf32>
    %308 = arith.divf %306, %307 : vector<8x1xf32>
    %309 = vector.broadcast %301 : vector<8x1xf32> to vector<8x32xf32>
    %310 = arith.subf %293, %309 : vector<8x32xf32>
    %cst_132 = arith.constant 9.99999996E-13 : f32
    %311 = vector.broadcast %cst_132 : f32 to vector<8x1xf32>
    %312 = arith.addf %308, %311 : vector<8x1xf32>
    %313 = math.rsqrt %312 : vector<8x1xf32>
    %314 = vector.broadcast %313 : vector<8x1xf32> to vector<8x32xf32>
    %315 = arith.mulf %310, %314 : vector<8x32xf32>
    %316 = vector.broadcast %295 : vector<1x32xf32> to vector<8x32xf32>
    %317 = arith.mulf %315, %316 : vector<8x32xf32>
    %318 = vector.broadcast %297 : vector<1x32xf32> to vector<8x32xf32>
    %319 = arith.addf %317, %318 : vector<8x32xf32>
    %c1_133 = arith.constant 1 : index
    %c0_134 = arith.constant 0 : index
    %c0_135 = arith.constant 0 : index
    %320 = vector.load %arg11[%c1_133, %c0_134, %c0_135] : memref<2x32x64xf32, #tpu.memory_space<vmem>>, vector<1x32x64xf32>
    %321 = vector.shape_cast %320 : vector<1x32x64xf32> to vector<32x64xf32>
    %cst_136 = arith.constant dense<0.000000e+00> : vector<8x64xf32>
    %322 = tpu.matmul %319, %321, %cst_136 {dimension_numbers = #tpu.dot_dimension_numbers<[1], [0], [0], [1], [0, 0, 1, 1], [], []>} : vector<8x32xf32>, vector<32x64xf32>, vector<8x64xf32> -> vector<8x64xf32>
    %c1_137 = arith.constant 1 : index
    %c0_138 = arith.constant 0 : index
    %c0_139 = arith.constant 0 : index
    %323 = vector.load %arg12[%c1_137, %c0_138, %c0_139] : memref<2x1x64xf32, #tpu.memory_space<vmem>>, vector<1x1x64xf32>
    %324 = vector.shape_cast %323 : vector<1x1x64xf32> to vector<1x64xf32>
    %325 = vector.broadcast %324 : vector<1x64xf32> to vector<8x64xf32>
    %326 = arith.addf %322, %325 : vector<8x64xf32>
    %cst_140 = arith.constant 5.000000e-01 : f32
    %327 = vector.broadcast %cst_140 : f32 to vector<8x64xf32>
    %328 = arith.mulf %327, %326 : vector<8x64xf32>
    %cst_141 = arith.constant 4.471500e-02 : f32
    %329 = vector.broadcast %cst_141 : f32 to vector<8x64xf32>
    %330 = arith.mulf %329, %326 : vector<8x64xf32>
    %331 = arith.mulf %330, %326 : vector<8x64xf32>
    %332 = arith.mulf %331, %326 : vector<8x64xf32>
    %333 = arith.addf %326, %332 : vector<8x64xf32>
    %cst_142 = arith.constant 0.797884583 : f32
    %334 = vector.broadcast %cst_142 : f32 to vector<8x64xf32>
    %335 = arith.mulf %334, %333 : vector<8x64xf32>
    %336 = math.tanh %335 : vector<8x64xf32>
    %cst_143 = arith.constant 1.000000e+00 : f32
    %337 = vector.broadcast %cst_143 : f32 to vector<8x64xf32>
    %338 = arith.addf %337, %336 : vector<8x64xf32>
    %339 = arith.mulf %328, %338 : vector<8x64xf32>
    %c1_144 = arith.constant 1 : index
    %c0_145 = arith.constant 0 : index
    %c0_146 = arith.constant 0 : index
    %340 = vector.load %arg13[%c1_144, %c0_145, %c0_146] : memref<2x64x32xf32, #tpu.memory_space<vmem>>, vector<1x64x32xf32>
    %341 = vector.shape_cast %340 : vector<1x64x32xf32> to vector<64x32xf32>
    %cst_147 = arith.constant dense<0.000000e+00> : vector<8x32xf32>
    %342 = tpu.matmul %339, %341, %cst_147 {dimension_numbers = #tpu.dot_dimension_numbers<[1], [0], [0], [1], [0, 0, 1, 1], [], []>} : vector<8x64xf32>, vector<64x32xf32>, vector<8x32xf32> -> vector<8x32xf32>
    %c1_148 = arith.constant 1 : index
    %c0_149 = arith.constant 0 : index
    %c0_150 = arith.constant 0 : index
    %343 = vector.load %arg14[%c1_148, %c0_149, %c0_150] : memref<2x1x32xf32, #tpu.memory_space<vmem>>, vector<1x1x32xf32>
    %344 = vector.shape_cast %343 : vector<1x1x32xf32> to vector<1x32xf32>
    %345 = vector.broadcast %344 : vector<1x32xf32> to vector<8x32xf32>
    %346 = arith.addf %342, %345 : vector<8x32xf32>
    %347 = arith.addf %346, %319 : vector<8x32xf32>
    %c1_151 = arith.constant 1 : index
    %c0_152 = arith.constant 0 : index
    %c0_153 = arith.constant 0 : index
    %348 = vector.load %arg15[%c1_151, %c0_152, %c0_153] : memref<2x1x32xf32, #tpu.memory_space<vmem>>, vector<1x1x32xf32>
    %349 = vector.shape_cast %348 : vector<1x1x32xf32> to vector<1x32xf32>
    %c1_154 = arith.constant 1 : index
    %c0_155 = arith.constant 0 : index
    %c0_156 = arith.constant 0 : index
    %350 = vector.load %arg16[%c1_154, %c0_155, %c0_156] : memref<2x1x32xf32, #tpu.memory_space<vmem>>, vector<1x1x32xf32>
    %351 = vector.shape_cast %350 : vector<1x1x32xf32> to vector<1x32xf32>
    %cst_157 = arith.constant dense<0.000000e+00> : vector<8xf32>
    %352 = vector.multi_reduction <add>, %347, %cst_157 [1] : vector<8x32xf32> to vector<8xf32>
    %353 = vector.shape_cast %352 : vector<8xf32> to vector<8x1xf32>
    %cst_158 = arith.constant 3.200000e+01 : f32
    %354 = vector.broadcast %cst_158 : f32 to vector<8x1xf32>
    %355 = arith.divf %353, %354 : vector<8x1xf32>
    %356 = vector.broadcast %355 : vector<8x1xf32> to vector<8x32xf32>
    %357 = arith.subf %347, %356 : vector<8x32xf32>
    %358 = arith.mulf %357, %357 : vector<8x32xf32>
    %cst_159 = arith.constant dense<0.000000e+00> : vector<8xf32>
    %359 = vector.multi_reduction <add>, %358, %cst_159 [1] : vector<8x32xf32> to vector<8xf32>
    %360 = vector.shape_cast %359 : vector<8xf32> to vector<8x1xf32>
    %cst_160 = arith.constant 3.200000e+01 : f32
    %361 = vector.broadcast %cst_160 : f32 to vector<8x1xf32>
    %362 = arith.divf %360, %361 : vector<8x1xf32>
    %363 = vector.broadcast %355 : vector<8x1xf32> to vector<8x32xf32>
    %364 = arith.subf %347, %363 : vector<8x32xf32>
    %cst_161 = arith.constant 9.99999996E-13 : f32
    %365 = vector.broadcast %cst_161 : f32 to vector<8x1xf32>
    %366 = arith.addf %362, %365 : vector<8x1xf32>
    %367 = math.rsqrt %366 : vector<8x1xf32>
    %368 = vector.broadcast %367 : vector<8x1xf32> to vector<8x32xf32>
    %369 = arith.mulf %364, %368 : vector<8x32xf32>
    %370 = vector.broadcast %349 : vector<1x32xf32> to vector<8x32xf32>
    %371 = arith.mulf %369, %370 : vector<8x32xf32>
    %372 = vector.broadcast %351 : vector<1x32xf32> to vector<8x32xf32>
    %373 = arith.addf %371, %372 : vector<8x32xf32>
    %374 = vector.extract_strided_slice %373 {offsets = [0, 0], sizes = [1, 32], strides = [1, 1]} : vector<8x32xf32> to vector<1x32xf32>
    %c0_162 = arith.constant 0 : index
    %c0_163 = arith.constant 0 : index
    %375 = vector.load %arg17[%c0_162, %c0_163] : memref<32x32xf32, #tpu.memory_space<vmem>>, vector<32x32xf32>
    %cst_164 = arith.constant dense<0.000000e+00> : vector<1x32xf32>
    %376 = tpu.matmul %374, %375, %cst_164 {dimension_numbers = #tpu.dot_dimension_numbers<[1], [0], [0], [1], [0, 0, 1, 1], [], []>} : vector<1x32xf32>, vector<32x32xf32>, vector<1x32xf32> -> vector<1x32xf32>
    %c0_165 = arith.constant 0 : index
    %c0_166 = arith.constant 0 : index
    %377 = vector.load %arg18[%c0_165, %c0_166] : memref<1x32xf32, #tpu.memory_space<vmem>>, vector<1x32xf32>
    %378 = arith.addf %376, %377 : vector<1x32xf32>
    %379 = math.tanh %378 : vector<1x32xf32>
    %c0_167 = arith.constant 0 : index
    %c0_168 = arith.constant 0 : index
    %380 = vector.load %arg19[%c0_167, %c0_168] : memref<1x32xf32, #tpu.memory_space<vmem>>, vector<1x32xf32>
    %381 = arith.mulf %379, %380 : vector<1x32xf32>
    %cst_169 = arith.constant dense<0.000000e+00> : vector<1xf32>
    %382 = vector.multi_reduction <add>, %381, %cst_169 [1] : vector<1x32xf32> to vector<1xf32>
    %383 = vector.shape_cast %382 : vector<1xf32> to vector<1x1xf32>
    %c0_170 = arith.constant 0 : index
    %c0_171 = arith.constant 0 : index
    %384 = vector.load %arg20[%c0_170, %c0_171] : memref<1x1xf32, #tpu.memory_space<vmem>>, vector<1x1xf32>
    %385 = arith.addf %383, %384 : vector<1x1xf32>
    %c0_172 = arith.constant 0 : index
    %c0_173 = arith.constant 0 : index
    %c0_174 = arith.constant 0 : index
    %386 = vector.load %arg21[%c0_172, %c0_173, %c0_174] : memref<1x1x1xf32, #tpu.memory_space<vmem>>, vector<1x1x1xf32>
    %387 = vector.shape_cast %386 : vector<1x1x1xf32> to vector<1x1xf32>
    %388 = vector.shape_cast %385 : vector<1x1xf32> to vector<1x1x1xf32>
    tpu.vector_store %arg21[%c0_172, %c0_173, %c0_174], %388 {strides = array<i32>} : memref<1x1x1xf32, #tpu.memory_space<vmem>>, vector<1x1x1xf32>,
    return
  }
  func.func @transform_0(%arg0: i32) -> (i32, i32, i32) {
    %c0_i32 = arith.constant 0 : i32
    %c0_i32_0 = arith.constant 0 : i32
    %c0_i32_1 = arith.constant 0 : i32
    return %arg0, %c0_i32, %c0_i32_0 : i32, i32, i32
  }
  func.func @transform_1(%arg0: i32) -> (i32, i32, i32) {
    %c0_i32 = arith.constant 0 : i32
    %c0_i32_0 = arith.constant 0 : i32
    %c0_i32_1 = arith.constant 0 : i32
    return %arg0, %c0_i32, %c0_i32_0 : i32, i32, i32
  }
  func.func @transform_2(%arg0: i32) -> (i32, i32) {
    %c0_i32 = arith.constant 0 : i32
    %c0_i32_0 = arith.constant 0 : i32
    %c0_i32_1 = arith.constant 0 : i32
    return %c0_i32, %c0_i32_0 : i32, i32
  }
  func.func @transform_3(%arg0: i32) -> (i32, i32) {
    %c0_i32 = arith.constant 0 : i32
    %c0_i32_0 = arith.constant 0 : i32
    %c0_i32_1 = arith.constant 0 : i32
    return %c0_i32, %c0_i32_0 : i32, i32
  }
  func.func @transform_4(%arg0: i32) -> (i32, i32, i32) {
    %c0_i32 = arith.constant 0 : i32
    %c0_i32_0 = arith.constant 0 : i32
    %c0_i32_1 = arith.constant 0 : i32
    %c0_i32_2 = arith.constant 0 : i32
    return %c0_i32, %c0_i32_0, %c0_i32_1 : i32, i32, i32
  }
  func.func @transform_5(%arg0: i32) -> (i32, i32, i32) {
    %c0_i32 = arith.constant 0 : i32
    %c0_i32_0 = arith.constant 0 : i32
    %c0_i32_1 = arith.constant 0 : i32
    %c0_i32_2 = arith.constant 0 : i32
    return %c0_i32, %c0_i32_0, %c0_i32_1 : i32, i32, i32
  }
  func.func @transform_6(%arg0: i32) -> (i32, i32, i32) {
    %c0_i32 = arith.constant 0 : i32
    %c0_i32_0 = arith.constant 0 : i32
    %c0_i32_1 = arith.constant 0 : i32
    %c0_i32_2 = arith.constant 0 : i32
    return %c0_i32, %c0_i32_0, %c0_i32_1 : i32, i32, i32
  }
  func.func @transform_7(%arg0: i32) -> (i32, i32, i32) {
    %c0_i32 = arith.constant 0 : i32
    %c0_i32_0 = arith.constant 0 : i32
    %c0_i32_1 = arith.constant 0 : i32
    %c0_i32_2 = arith.constant 0 : i32
    return %c0_i32, %c0_i32_0, %c0_i32_1 : i32, i32, i32
  }
  func.func @transform_8(%arg0: i32) -> (i32, i32, i32) {
    %c0_i32 = arith.constant 0 : i32
    %c0_i32_0 = arith.constant 0 : i32
    %c0_i32_1 = arith.constant 0 : i32
    %c0_i32_2 = arith.constant 0 : i32
    return %c0_i32, %c0_i32_0, %c0_i32_1 : i32, i32, i32
  }
  func.func @transform_9(%arg0: i32) -> (i32, i32, i32) {
    %c0_i32 = arith.constant 0 : i32
    %c0_i32_0 = arith.constant 0 : i32
    %c0_i32_1 = arith.constant 0 : i32
    %c0_i32_2 = arith.constant 0 : i32
    return %c0_i32, %c0_i32_0, %c0_i32_1 : i32, i32, i32
  }
  func.func @transform_10(%arg0: i32) -> (i32, i32, i32) {
    %c0_i32 = arith.constant 0 : i32
    %c0_i32_0 = arith.constant 0 : i32
    %c0_i32_1 = arith.constant 0 : i32
    %c0_i32_2 = arith.constant 0 : i32
    return %c0_i32, %c0_i32_0, %c0_i32_1 : i32, i32, i32
  }
  func.func @transform_11(%arg0: i32) -> (i32, i32, i32) {
    %c0_i32 = arith.constant 0 : i32
    %c0_i32_0 = arith.constant 0 : i32
    %c0_i32_1 = arith.constant 0 : i32
    %c0_i32_2 = arith.constant 0 : i32
    return %c0_i32, %c0_i32_0, %c0_i32_1 : i32, i32, i32
  }
  func.func @transform_12(%arg0: i32) -> (i32, i32, i32) {
    %c0_i32 = arith.constant 0 : i32
    %c0_i32_0 = arith.constant 0 : i32
    %c0_i32_1 = arith.constant 0 : i32
    %c0_i32_2 = arith.constant 0 : i32
    return %c0_i32, %c0_i32_0, %c0_i32_1 : i32, i32, i32
  }
  func.func @transform_13(%arg0: i32) -> (i32, i32, i32) {
    %c0_i32 = arith.constant 0 : i32
    %c0_i32_0 = arith.constant 0 : i32
    %c0_i32_1 = arith.constant 0 : i32
    %c0_i32_2 = arith.constant 0 : i32
    return %c0_i32, %c0_i32_0, %c0_i32_1 : i32, i32, i32
  }
  func.func @transform_14(%arg0: i32) -> (i32, i32, i32) {
    %c0_i32 = arith.constant 0 : i32
    %c0_i32_0 = arith.constant 0 : i32
    %c0_i32_1 = arith.constant 0 : i32
    %c0_i32_2 = arith.constant 0 : i32
    return %c0_i32, %c0_i32_0, %c0_i32_1 : i32, i32, i32
  }
  func.func @transform_15(%arg0: i32) -> (i32, i32, i32) {
    %c0_i32 = arith.constant 0 : i32
    %c0_i32_0 = arith.constant 0 : i32
    %c0_i32_1 = arith.constant 0 : i32
    %c0_i32_2 = arith.constant 0 : i32
    return %c0_i32, %c0_i32_0, %c0_i32_1 : i32, i32, i32
  }
  func.func @transform_16(%arg0: i32) -> (i32, i32) {
    %c0_i32 = arith.constant 0 : i32
    %c0_i32_0 = arith.constant 0 : i32
    %c0_i32_1 = arith.constant 0 : i32
    return %c0_i32, %c0_i32_0 : i32, i32
  }
  func.func @transform_17(%arg0: i32) -> (i32, i32) {
    %c0_i32 = arith.constant 0 : i32
    %c0_i32_0 = arith.constant 0 : i32
    %c0_i32_1 = arith.constant 0 : i32
    return %c0_i32, %c0_i32_0 : i32, i32
  }
  func.func @transform_18(%arg0: i32) -> (i32, i32) {
    %c0_i32 = arith.constant 0 : i32
    %c0_i32_0 = arith.constant 0 : i32
    %c0_i32_1 = arith.constant 0 : i32
    return %c0_i32, %c0_i32_0 : i32, i32
  }
  func.func @transform_19(%arg0: i32) -> (i32, i32) {
    %c0_i32 = arith.constant 0 : i32
    %c0_i32_0 = arith.constant 0 : i32
    %c0_i32_1 = arith.constant 0 : i32
    return %c0_i32, %c0_i32_0 : i32, i32
  }
  func.func @transform_20(%arg0: i32) -> (i32, i32, i32) {
    %c0_i32 = arith.constant 0 : i32
    %c0_i32_0 = arith.constant 0 : i32
    %c0_i32_1 = arith.constant 0 : i32
    return %arg0, %c0_i32, %c0_i32_0 : i32, i32, i32
  }
}

</mosaic_0001>

<bundles_post_ra>
// kernel: clrp_forward.1
= control target key start
LH: loop header
LB: loop body
LE: loop exit
PB: predicated region body
PF: predicated region fallthrough
CT: control target
= control target key end

     0   :  { %s4070_s23 = smov 0   ;;  %s4524_s0 = inlined_call_operand.vmem [shape: f32[2,8,32], index: 0, kind: input, shape index: {}]   ;;  %s4525_s1 = inlined_call_operand.vmem [shape: f32[2,1,8], index: 1, kind: input, shape index: {}]   ;;  %s4526_s2 = inlined_call_operand.vmem [shape: f32[1,32], index: 2, kind: input, shape index: {}]   ;;  %s4527_s3 = inlined_call_operand.vmem [shape: f32[1,32], index: 3, kind: input, shape index: {}]   ;;  %s4528_s4 = inlined_call_operand.vmem [shape: f32[2,32,96], index: 4, kind: input, shape index: {}]   ;;  %s4529_s5 = inlined_call_operand.vmem [shape: f32[2,1,96], index: 5, kind: input, shape index: {}]   ;;  %s4530_s6 = inlined_call_operand.vmem [shape: f32[2,32,32], index: 6, kind: input, shape index: {}]   ;;  %s4531_s7 = inlined_call_operand.vmem [shape: f32[2,1,32], index: 7, kind: input, shape index: {}]   ;;  %s4532_s8 = inlined_call_operand.vmem [shape: f32[2,1,32], index: 8, kind: input, shape index: {}]   ;;  %s4533_s9 = inlined_call_operand.vmem [shape: f32[2,1,32], index: 9, kind: input, shape index: {}]   ;;  %s4534_s10 = inlined_call_operand.vmem [shape: f32[2,32,64], index: 10, kind: input, shape index: {}]   ;;  %s4535_s11 = inlined_call_operand.vmem [shape: f32[2,1,64], index: 11, kind: input, shape index: {}]   ;;  %s4536_s12 = inlined_call_operand.vmem [shape: f32[2,64,32], index: 12, kind: input, shape index: {}]   ;;  %s4537_s13 = inlined_call_operand.vmem [shape: f32[2,1,32], index: 13, kind: input, shape index: {}]   ;;  %s4538_s14 = inlined_call_operand.vmem [shape: f32[2,1,32], index: 14, kind: input, shape index: {}]   ;;  %s4539_s15 = inlined_call_operand.vmem [shape: f32[2,1,32], index: 15, kind: input, shape index: {}]   ;;  %s4540_s16 = inlined_call_operand.vmem [shape: f32[32,32], index: 16, kind: input, shape index: {}]   ;;  %s4541_s17 = inlined_call_operand.vmem [shape: f32[1,32], index: 17, kind: input, shape index: {}]   ;;  %s4542_s18 = inlined_call_operand.vmem [shape: f32[1,32], index: 18, kind: input, shape index: {}]   ;;  %s4543_s19 = inlined_call_operand.<no memory space> [shape: f32[1,1], index: 19, kind: input, shape index: {}]   ;;  %s4544_s20 = inlined_call_operand.vmem [shape: f32[2,1,1], index: 20, kind: output, shape index: {}]  }
   0x1   :  { %4553 = sst [smem:[#allocation3_spill]] %s4524_s0  ;;  %v25_v0 = vstv %s4543_s19 }
   0x2   :  { %4554 = sst [smem:[#allocation4_spill]] %s4525_s1  ;;  %26 = vst [vmem:[#allocation2] sm:$0x1] %v25_v0 }
   0x3   :  { %4555 = sst [smem:[#allocation5_spill]] %s4526_s2 }
   0x4   :  { %4556 = sst [smem:[#allocation6_spill]] %s4527_s3 }
   0x5   :  { %4557 = sst [smem:[#allocation7_spill]] %s4528_s4 }
   0x6 LB: > { %s3419_s24 = sadd.s32 4294967295, %s3946_s23   ;;  %p3423_p0 = scmp.ge.s32.totalorder %s3946_s23, 1  ;;  %s3946_s23 = sphi %s4070_s23, %s32_s23  }
   0x7   : > { %p571_p1 = scmp.lt.s32.totalorder %s3946_s23, 3 }
   0x9   : > { %p572_p2 = pnand %p3423_p0, %p571_p1 }
   0xa   : > { %p629_p3 = scmp.lt.s32.totalorder (!%p572_p2), %s3419_s24, 1  ;;  %vm645_vm0 = vcmask (!%p572_p2), 261120   ;;  %s4558_s3 = sld [smem:[#allocation3_spill]] (!%p572_p2)  ;;  %v3948_v11 = vmov (!%p572_p2), 0.0|0.0   ;;  %vm3949_vm1 = vmmov (!%p572_p2), 0   ;;  %v3950_v14 = vmov (!%p572_p2), 0.0  }
   0xb   : > { %575 = sbr.rel (%p572_p2) target bundleno = 8010 (0x1f4a), region = 100  ;;  %s4559_s4 = sld [smem:[#allocation7_spill]] (!%p572_p2)  ;;  %3816 = vmatprep.subr.bf16.mxu0 (!%p572_p2), %v3948_v11  ;;  %3611 = vmatprep.mubr.msk.f32.mxu0 (!%p572_p2), %vm3949_vm1, %v3950_v14  ;;  %v3427_v25 = vld [vmem:[%s4529_s5] ss:$0 sm:$0xff] (!%p572_p2)  ;;  %vm771_vm2 = vcmask (!%p572_p2), 64512   ;;  %v763_v32 = vlaneseq (!%p572_p2)  ;;  %v759_v57 = vld [vmem:[%s4530_s6 + $0x8] sm:$0xff] (!%p572_p2) }
   0xc   : > { %3614 = vmatprep.subr.mxu1 (!%p572_p2), %v3950_v14  ;;  %3616 = vmatprep.mubr.msk.f32.mxu1 (!%p572_p2), %vm3949_vm1, %v3950_v14  ;;  %s4560_s25 = sld [smem:[#allocation5_spill]] (!%p572_p2)  ;;  %s4561_s27 = sld [smem:[#allocation6_spill]] (!%p572_p2)  ;;  %vm1868_vm3 = vcmask (!%p572_p2), 523264   ;;  %vm3355_vm4 = vcmask (!%p572_p2), 253952   ;;  %vm3361_vm5 = vcmask (!%p572_p2), 0  }
   0xd   : > { %s3951_s30 = smov (!%p572_p2), 120   ;;  %s3952_s0 = smov (!%p572_p2), 96   ;;  %v764_v35 = vshrl.u32 (!%p572_p2), %v763_v32, 7 }
   0xe   : > { %s3953_s21 = smov (!%p572_p2), 88   ;;  %s4549_s28 = smov (!%p572_p2), 72  }
   0xf   : > { %v765_v37 = vsub.s32 (!%p572_p2), 0, %v764_v35  ;;  %s4546_s22 = smov (!%p572_p2), 40   ;;  %s4567_s29 = smov (!%p572_p2), 104  }
  0x10   : > { %s4568_s1 = smov (!%p572_p2), 48  }
  0x11   : > { %v674_v8 = vld [vmem:[%s4559_s4] sm:$0xff] (!%p572_p2)  ;;  %v675_v9 = vld [vmem:[%s4559_s4 + $0x8] sm:$0xff] (!%p572_p2)  ;;  %v676_v10 = vld [vmem:[%s4559_s4 + $0x10] sm:$0xff] (!%p572_p2) }
  0x12   : > { %s4571_s24 = smov (!%p629_p3, %s3419_s24), 1  ;;  %v3817_v12 = vpack.c.bf16 %v675_v9, %v674_v8  ;;  %v677_v13 = vld [vmem:[%s4559_s4 + $0x18] sm:$0xff]  ;;  %v3425_v20 = vld [vmem:[%s4560_s25] ss:$0 sm:$0xff]  ;;  %s3954_s25 = smov 56  }
  0x13   : > { %s3424_s19 = sshll.u32 %s4571_s24, 3  ;;  %v3820_v15 = vpack.c.bf16 %v677_v13, %v676_v10  ;;  %v3426_v22 = vld [vmem:[%s4561_s27] ss:$0 sm:$0xff]  ;;  %s4550_s27 = smov 112  }
  0x14   : > { %s632_s26 = scalar_lea.vmem %s4558_s3, %s3424_s19  ;;  %3818 = vmatpush3.bf16.msra.mxu0 %v3817_v12  ;;  %s4562_s19 = sld [smem:[#allocation4_spill]] }
  0x15   : > { %v642_v1 = vld [vmem:[%s632_s26] sm:$0xff]  ;;  %3819 = vmatprep.subr.bf16.mxu0 %v3948_v11  ;;  %s4551_s3 = smov 64   ;;  %s4552_s26 = smov 80  }
  0x16   : > { %v646_v2 = vsel %vm645_vm0, %v642_v1, 0.0 }
  0x17   : > { %647 = vadd.xlane.f32.xlu0 %v646_v2  ;;  %v758_v2 = vld [vmem:[%s4530_s6] sm:$0xff] }
  0x18   : > { %3821 = vmatpush3.bf16.msra.mxu0 %v3820_v15 }
  0x19   : > { %3624 = vmatprep.subr.mxu0 %v3950_v14 }
  0x1a   : > { %s635_s2 = scalar_lea.vmem %s4562_s19, %s4571_s24  ;;  %s4547_s19 = smov 48  }
  0x1b   : > { %v639_v33 = vld [vmem:[%s635_s2] sm:$0x1]  ;;  %s4548_s2 = smov 104  }
  0x1c   : > { %v640_v34 = vsub.f32 1.0, %v639_v33  ;;  %v760_v33 = vld [vmem:[%s4530_s6 + $0x10] sm:$0xff] }
  0x1e   : > { %v641_v36 = vmul.f32 -10000.0, %v640_v34 }
  0x20   : > { %v4144_v38 = vrot.slane %v641_v36, %v765_v37 }
  0xa4   : > { %v648_v3 = vpop.xlane.xlu0 %647 }
  0xa5   : > { %v650_v4 = vmul.f32 0.03125, %v648_v3 }
  0xa7   : > { %v651_v5 = vsub.f32 %v642_v1, %v650_v4 }
  0xa9   : > { %v652_v6 = vmul.f32 %v651_v5, %v651_v5 }
  0xab   : > { %v653_v7 = vsel %vm645_vm0, %v652_v6, 0.0 }
  0xac   : > { %654 = vadd.xlane.f32.xlu0 %v653_v7 }
 0x139   : > { %v655_v16 = vpop.xlane.xlu0 %654 }
 0x13a   : > { %v656_v17 = vmul.f32 0.03125, %v655_v16 }
 0x13c   : > { %v657_v18 = vadd.f32 1e-12, %v656_v17 }
 0x13e   : > { %3892 = vrsqrt.f32 %v657_v18 }
 0x148   : > { %v3893_v19 = vpop.eup %3892 }
 0x149   : > { %v659_v21 = vmul.f32 %v3893_v19, %v651_v5 }
 0x14b   : > { %v666_v23 = vmul.f32 %v3425_v20, %v659_v21 }
 0x14d   : > { %v4112_v24 = vadd.f32 %v3426_v22, %v666_v23 }
 0x14f   : > { %3612 = vmatmul.mubr.msk.f32.vlgmr.msra.gmra.mrb[0].mxu0 %vm645_vm0, %v4112_v24 }
 0x150   : > { %3626 = vmatprep.mubr.msk.f32.mxu0 %vm3949_vm1, %v3950_v14 }
 0x222   : > { %v754_v26 = vpop.f32.mrb[0].mxu0 }
 0x223   : > { %v4121_v27 = vadd.f32 %v3427_v25, %v754_v26  ;;  %v3613_v28 = vpop.f32.mrb[1].mxu0 }
 0x225   : > { %933 = vrot.lane.b32.xlu0 %v4121_v27, %s3951_s30  ;;  %769 = vrot.lane.b32.xlu1 %v4121_v27, %s3952_s0 }
 0x229   : > { %935 = vrot.lane.b32.xlu1 %v4121_v27, %s3953_s21 }
 0x297   : > { %v770_v29 = vpop.permute.xlu1 %769  ;;  %v934_v31 = vpop.permute.xlu0 %933 }
 0x298   : > { %3615 = vmatpush3.xpose.msk.msra.mxu1 %vm771_vm2, %v770_v29 }
 0x299   : > { %3619 = vmatprep.subr.mxu1 %v3950_v14 }
 0x29b   : > { %3617 = vmatmul.mubr.msk.f32.vlgmr.msra.gmra.mrb[0].mxu1 %vm771_vm2, %v4121_v27  ;;  %v936_v30 = vpop.permute.xlu1 %935 }
 0x29c   : > { %3625 = vmatpush3.xpose.msk.msra.mxu0 %vm771_vm2, %v936_v30  ;;  %3621 = vmatprep.mubr.msk.f32.mxu1 %vm3949_vm1, %v3950_v14 }
 0x29d   : > { %3634 = vmatprep.subr.mxu0 %v3950_v14 }
 0x29f   : > { %3627 = vmatmul.mubr.msk.f32.vlgmr.msra.gmra.mrb[2].mxu0 %vm771_vm2, %v934_v31 }
 0x2a0   : > { %3636 = vmatprep.mubr.msk.f32.mxu0 %vm3949_vm1, %v3950_v14  ;;  %3635 = vmatpush3.msra.mxu0 %v759_v57 }
 0x2a1   : > { %3644 = vmatprep.subr.mxu0 %v3950_v14 }
 0x36e   : > { %v842_v39 = vpop.f32.mrb[0].mxu1 }
 0x36f   : > { %v843_v40 = vadd.f32 %v842_v39, %v4144_v38  ;;  %v3618_v41 = vpop.f32.mrb[1].mxu1 }
 0x371   : > { %v846_v42 = vsel %vm771_vm2, %v843_v40, -inf }
 0x372   : > { %847 = vmax.xlane.f32.xlu1 %v846_v42  ;;  %v1007_v43 = vpop.f32.mrb[2].mxu0 }
 0x373   : > { %v1008_v44 = vadd.f32 %v1007_v43, %v4144_v38  ;;  %v3628_v45 = vpop.f32.mrb[3].mxu0 }
 0x375   : > { %v1011_v46 = vsel %vm771_vm2, %v1008_v44, -inf }
 0x376   : > { %1012 = vmax.xlane.f32.xlu0 %v1011_v46  ;;  %v761_v46 = vld [vmem:[%s4530_s6 + $0x18] sm:$0xff] }
 0x38c   : > { %1022 = vrot.lane.b32.xlu0 %v4121_v27, %s3954_s25 }
 0x3ff   : > { %v848_v47 = vpop.xlane.xlu1 %847 }
 0x400   : > { %v849_v48 = vsub.f32 %v843_v40, %v848_v47 }
 0x402   : > { %v850_v49 = vmul.f32 1.442695, %v849_v48 }
 0x403   : > { %v1013_v50 = vpop.xlane.xlu0 %1012 }
 0x404   : > { %3894 = vpow2.f32 %v850_v49  ;;  %v1014_v51 = vsub.f32 %v1008_v44, %v1013_v50 }
 0x406   : > { %v1015_v52 = vmul.f32 1.442695, %v1014_v51 }
 0x407   : > { %v1023_v63 = vpop.permute.xlu0 %1022 }
 0x408   : > { %3896 = vpow2.f32 %v1015_v52 }
 0x40e   : > { %v3895_v53 = vpop.eup %3894 }
 0x40f   : > { %v852_v54 = vsel %vm771_vm2, %v3895_v53, 0.0 }
 0x410   : > { %853 = vadd.xlane.f32.xlu1 %v852_v54 }
 0x412   : > { %v3897_v55 = vpop.eup %3896 }
 0x413   : > { %v1017_v56 = vsel %vm771_vm2, %v3897_v55, 0.0 }
 0x414   : > { %1018 = vadd.xlane.f32.xlu1 %v1017_v56  ;;  %v3445_v56 = vld [vmem:[%s4531_s7] ss:$0 sm:$0xff] }
 0x425   : > { %857 = vrot.lane.b32.xlu1 %v4121_v27, %s4551_s3 }
 0x429   : > { %1246 = vrot.lane.b32.xlu1 %v4121_v27, %s4552_s26 }
 0x42d   : > { %1244 = vrot.lane.b32.xlu1 %v4121_v27, %s4550_s27  ;;  %s4566_s27 = smov 72  }
 0x49d   : > { %v854_v58 = vpop.xlane.xlu1 %853 }
 0x49e   : > { %3898 = vrcp.f32 %v854_v58 }
 0x4a1   : > { %v1019_v59 = vpop.xlane.xlu1 %1018 }
 0x4a2   : > { %3900 = vrcp.f32 %v1019_v59 }
 0x4a5   : > { %v858_v60 = vpop.permute.xlu1 %857 }
 0x4a6   : > { %3620 = vmatpush3.msra.mxu1 %v858_v60 }
 0x4a7   : > { %3629 = vmatprep.subr.mxu1 %v3950_v14 }
 0x4a8   : > { %v3899_v61 = vpop.eup %3898 }
 0x4a9   : > { %v856_v62 = vmul.f32 %v3899_v61, %v3895_v53  ;;  %v1247_v5 = vpop.permute.xlu1 %1246 }
 0x4ab   : > { %3622 = vmatmul.mubr.msk.f32.vlgmr.msra.gmra.mrb[2].mxu1 %vm771_vm2, %v856_v62 }
 0x4ac   : > { %v3901_v0 = vpop.eup %3900  ;;  %3630 = vmatpush3.msra.mxu1 %v1023_v63  ;;  %3631 = vmatprep.mubr.msk.f32.mxu1 %vm3949_vm1, %v3950_v14 }
 0x4ad   : > { %v1021_v1 = vmul.f32 %v3901_v0, %v3897_v55  ;;  %3639 = vmatprep.subr.mxu1 %v3950_v14  ;;  %v1245_v8 = vpop.permute.xlu1 %1244 }
 0x4af   : > { %3632 = vmatmul.mubr.msk.f32.vlgmr.msra.gmra.mrb[4].mxu1 %vm771_vm2, %v1021_v1 }
 0x4b0   : > { %3641 = vmatprep.mubr.msk.f32.mxu1 %vm3949_vm1, %v3950_v14  ;;  %3640 = vmatpush3.msra.mxu1 %v758_v2 }
 0x4b1   : > { %3649 = vmatprep.subr.mxu1 %v3950_v14 }
 0x57e   : > { %v929_v3 = vpop.f32.mrb[2].mxu1 }
 0x57f   : > { %v3623_v4 = vpop.f32.mrb[3].mxu1  ;;  %3642 = vmatmul.mubr.msk.f32.vlgmr.msra.gmra.mrb[6].mxu1 %vm771_vm2, %v929_v3  ;;  %v1760_v3 = vld [vmem:[%s4534_s10] sm:$0xff] }
 0x580   : > { %3651 = vmatprep.mubr.msk.f32.mxu1 %vm3949_vm1, %v3950_v14  ;;  %v1761_v4 = vld [vmem:[%s4534_s10 + $0x8] sm:$0xff] }
 0x582   : > { %v1094_v6 = vpop.f32.mrb[4].mxu1 }
 0x583   : > { %v3633_v7 = vpop.f32.mrb[5].mxu1  ;;  %3637 = vmatmul.mubr.msk.f32.vlgmr.msra.gmra.mrb[4].mxu0 %vm771_vm2, %v1094_v6  ;;  %v1763_v6 = vld [vmem:[%s4534_s10 + $0x18] sm:$0xff] }
 0x584   : > { %3645 = vmatpush3.xpose.msk.msra.mxu0 %vm771_vm2, %v1247_v5  ;;  %3646 = vmatprep.mubr.msk.f32.mxu0 %vm3949_vm1, %v3950_v14  ;;  %v3823_v5 = vpack.c.bf16 %v1761_v4, %v1760_v3  ;;  %v3452_v3 = vld [vmem:[%s4538_s14] ss:$0 sm:$0xff] }
 0x585   : > { %3654 = vmatprep.subr.mxu0 %v3950_v14 }
 0x587   : > { %3647 = vmatmul.mubr.msk.f32.vlgmr.msra.gmra.mrb[6].mxu0 %vm771_vm2, %v1245_v8 }
 0x588   : > { %3656 = vmatprep.mubr.msk.f32.mxu0 %vm3949_vm1, %v3950_v14  ;;  %3655 = vmatpush3.msra.mxu0 %v760_v33  ;;  %v3448_v33 = vld [vmem:[%s4535_s11] ss:$0 sm:$0xff] }
 0x589   : > { %3664 = vmatprep.subr.mxu0 %v3950_v14 }
 0x652   : > { %v1240_v9 = vpop.f32.mrb[6].mxu1 }
 0x653   : > { %v3643_v10 = vpop.f32.mrb[7].mxu1 }
 0x656   : > { %v1167_v12 = vpop.f32.mrb[4].mxu0 }
 0x657   : > { %v1241_v13 = vadd.f32 %v1240_v9, %v1167_v12  ;;  %v3638_v15 = vpop.f32.mrb[5].mxu0 }
 0x65a   : > { %v1318_v16 = vpop.f32.mrb[6].mxu0 }
 0x65b   : > { %v1319_v17 = vadd.f32 %v1318_v16, %v4144_v38  ;;  %v3648_v18 = vpop.f32.mrb[7].mxu0  ;;  %v3447_v16 = vld [vmem:[%s4533_s9] ss:$0 sm:$0xff] }
 0x65d   : > { %v1322_v19 = vsel %vm771_vm2, %v1319_v17, -inf }
 0x65e   : > { %1323 = vmax.xlane.f32.xlu1 %v1322_v19  ;;  %v1853_v19 = vld [vmem:[%s4536_s12] sm:$0xff] }
 0x66f   : > { %1333 = vrot.lane.b32.xlu1 %v4121_v27, %s4547_s19 }
 0x673   : > { %1483 = vrot.lane.b32.xlu1 %v4121_v27, %s4548_s2  ;;  %s4569_s2 = smov 40  }
 0x6eb   : > { %v1324_v20 = vpop.xlane.xlu1 %1323 }
 0x6ec   : > { %v1325_v21 = vsub.f32 %v1319_v17, %v1324_v20  ;;  %v1854_v20 = vld [vmem:[%s4536_s12 + $0x8] sm:$0xff] }
 0x6ee   : > { %v1326_v22 = vmul.f32 1.442695, %v1325_v21  ;;  %v3829_v21 = vpack.c.bf16 %v1854_v20, %v1853_v19 }
 0x6ef   : > { %v1334_v23 = vpop.permute.xlu1 %1333 }
 0x6f0   : > { %3902 = vpow2.f32 %v1326_v22  ;;  %3650 = vmatpush3.msra.mxu1 %v1334_v23  ;;  %v1855_v22 = vld [vmem:[%s4536_s12 + $0x10] sm:$0xff]  ;;  %v1856_v23 = vld [vmem:[%s4536_s12 + $0x18] sm:$0xff] }
 0x6f1   : > { %3659 = vmatprep.subr.mxu1 %v3950_v14 }
 0x6f3   : > { %v1484_v32 = vpop.permute.xlu1 %1483 }
 0x6fa   : > { %v3903_v25 = vpop.eup %3902 }
 0x6fb   : > { %v1328_v26 = vsel %vm771_vm2, %v3903_v25, 0.0 }
 0x6fc   : > { %1329 = vadd.xlane.f32.xlu0 %v1328_v26  ;;  %v1857_v26 = vld [vmem:[%s4536_s12 + $0x20] sm:$0xff] }
 0x712   : > { %1485 = vrot.lane.b32.xlu0 %v4121_v27, %s4549_s28 }
 0x789   : > { %v1330_v28 = vpop.xlane.xlu0 %1329 }
 0x78a   : > { %3904 = vrcp.f32 %v1330_v28  ;;  %v1858_v28 = vld [vmem:[%s4536_s12 + $0x28] sm:$0xff] }
 0x78d   : > { %v1486_v31 = vpop.permute.xlu0 %1485 }
 0x794   : > { %v3905_v29 = vpop.eup %3904 }
 0x795   : > { %v1332_v30 = vmul.f32 %v3905_v29, %v3903_v25  ;;  %v3832_v25 = vpack.c.bf16 %v1856_v23, %v1855_v22  ;;  %v3835_v29 = vpack.c.bf16 %v1858_v28, %v1857_v26 }
 0x797   : > { %3652 = vmatmul.mubr.msk.f32.vlgmr.msra.gmra.mrb[8].mxu1 %vm771_vm2, %v1332_v30  ;;  %v1859_v30 = vld [vmem:[%s4536_s12 + $0x30] sm:$0xff] }
 0x798   : > { %3660 = vmatpush3.xpose.msk.msra.mxu1 %vm771_vm2, %v1486_v31  ;;  %3661 = vmatprep.mubr.msk.f32.mxu1 %vm3949_vm1, %v3950_v14  ;;  %v1860_v31 = vld [vmem:[%s4536_s12 + $0x38] sm:$0xff] }
 0x799   : > { %3669 = vmatprep.subr.mxu1 %v3950_v14 }
 0x79b   : > { %3662 = vmatmul.mubr.msk.f32.vlgmr.msra.gmra.mrb[10].mxu1 %vm771_vm2, %v1484_v32  ;;  %v3838_v32 = vpack.c.bf16 %v1860_v31, %v1859_v30 }
 0x79c   : > { %3671 = vmatprep.mubr.msk.f32.mxu1 %vm3949_vm1, %v3950_v14  ;;  %3670 = vmatpush3.msra.mxu1 %v761_v46 }
 0x79d   : > { %3828 = vmatprep.subr.bf16.mxu1 %v3948_v11 }
 0x86a   : > { %v1405_v34 = vpop.f32.mrb[8].mxu1 }
 0x86b   : > { %v3653_v35 = vpop.f32.mrb[9].mxu1  ;;  %3657 = vmatmul.mubr.msk.f32.vlgmr.msra.gmra.mrb[8].mxu0 %vm771_vm2, %v1405_v34 }
 0x86c   : > { %3666 = vmatprep.mubr.msk.f32.mxu0 %vm3949_vm1, %v3950_v14 }
 0x86e   : > { %v1557_v36 = vpop.f32.mrb[10].mxu1 }
 0x86f   : > { %v1558_v37 = vadd.f32 %v1557_v36, %v4144_v38  ;;  %v3663_v39 = vpop.f32.mrb[11].mxu1 }
 0x871   : > { %v1561_v40 = vsel %vm771_vm2, %v1558_v37, -inf }
 0x872   : > { %1562 = vmax.xlane.f32.xlu1 %v1561_v40 }
 0x8ff   : > { %v1563_v41 = vpop.xlane.xlu1 %1562 }
 0x900   : > { %v1564_v42 = vsub.f32 %v1558_v37, %v1563_v41 }
 0x902   : > { %v1565_v43 = vmul.f32 1.442695, %v1564_v42 }
 0x904   : > { %3906 = vpow2.f32 %v1565_v43 }
 0x90e   : > { %v3907_v44 = vpop.eup %3906 }
 0x90f   : > { %v1567_v45 = vsel %vm771_vm2, %v3907_v44, 0.0 }
 0x910   : > { %1568 = vadd.xlane.f32.xlu0 %v1567_v45 }
 0x926   : > { %1572 = vrot.lane.b32.xlu0 %v4121_v27, %s4546_s22 }
 0x93e   : > { %v1478_v47 = vpop.f32.mrb[8].mxu0 }
 0x93f   : > { %v1482_v48 = vadd.f32 %v1478_v47, %v1241_v13  ;;  %v3658_v49 = vpop.f32.mrb[9].mxu0  ;;  %v3446_v13 = vld [vmem:[%s4532_s8] ss:$0 sm:$0xff] }
 0x940   : > { %v3450_v47 = vld [vmem:[%s4537_s13] ss:$0 sm:$0xff] }
 0x99d   : > { %v1569_v50 = vpop.xlane.xlu0 %1568 }
 0x99e   : > { %3908 = vrcp.f32 %v1569_v50 }
 0x9a1   : > { %v1573_v51 = vpop.permute.xlu0 %1572 }
 0x9a2   : > { %3665 = vmatpush3.msra.mxu0 %v1573_v51 }
 0x9a3   : > { %3822 = vmatprep.subr.bf16.mxu0 %v3948_v11 }
 0x9a8   : > { %v3909_v52 = vpop.eup %3908 }
 0x9a9   : > { %v1571_v53 = vmul.f32 %v3909_v52, %v3907_v44 }
 0x9ab   : > { %3667 = vmatmul.mubr.msk.f32.vlgmr.msra.gmra.mrb[10].mxu0 %vm771_vm2, %v1571_v53 }
 0x9ac   : > { %3682 = vmatprep.mubr.msk.f32.mxu0 %vm3949_vm1, %v3950_v14  ;;  %3824 = vmatpush3.bf16.msra.mxu0 %v3823_v5  ;;  %v3453_v5 = vld [vmem:[%s4539_s15] ss:$0 sm:$0xff] }
 0x9ad   : > { %3825 = vmatprep.subr.bf16.mxu0 %v3948_v11 }
 0xa7e   : > { %v1644_v27 = vpop.f32.mrb[10].mxu0 }
 0xa7f   : > { %v3668_v54 = vpop.f32.mrb[11].mxu0  ;;  %3672 = vmatmul.mubr.msk.f32.vlgmr.msra.gmra.mrb[12].mxu1 %vm771_vm2, %v1644_v27 }
 0xa80   : > { %3701 = vmatprep.mubr.msk.f32.mxu1 %vm3949_vm1, %v3950_v14  ;;  %3830 = vmatpush3.bf16.msra.mxu1 %v3829_v21 }
 0xa81   : > { %3831 = vmatprep.subr.bf16.mxu1 %v3948_v11 }
 0xa84   : > { %3833 = vmatpush3.bf16.msra.mxu1 %v3832_v25 }
 0xa85   : > { %3834 = vmatprep.subr.bf16.mxu1 %v3948_v11 }
 0xa88   : > { %3836 = vmatpush3.bf16.msra.mxu1 %v3835_v29 }
 0xa89   : > { %3837 = vmatprep.subr.bf16.mxu1 %v3948_v11 }
 0xa8c   : > { %3839 = vmatpush3.bf16.msra.mxu1 %v3838_v32 }
 0xa8d   : > { %3720 = vmatprep.subr.mxu1 %v3950_v14 }
 0xb52   : > { %v1717_v55 = vpop.f32.mrb[12].mxu1 }
 0xb53   : > { %v1721_v57 = vadd.f32 %v1717_v55, %v1482_v48  ;;  %v3673_v58 = vpop.f32.mrb[13].mxu1 }
 0xb54   : > { %v3455_v58 = vld [vmem:[%s4559_s4 + $0x28] sm:$0xff] }
 0xb55   : > { %v1729_v59 = vadd.f32 %v3445_v56, %v1721_v57  ;;  %v3454_v57 = vld [vmem:[%s4559_s4 + $0x20] sm:$0xff] }
 0xb57   : > { %v1730_v60 = vadd.f32 %v1729_v59, %v4112_v24  ;;  %v1762_v24 = vld [vmem:[%s4534_s10 + $0x10] sm:$0xff]  ;;  %v3841_v59 = vpack.c.bf16 %v3455_v58, %v3454_v57 }
 0xb58   : > { %v3826_v7 = vpack.c.bf16 %v1763_v6, %v1762_v24 }
 0xb59   : > { %v1733_v61 = vsel %vm645_vm0, %v1730_v60, 0.0 }
 0xb5a   : > { %1734 = vadd.xlane.f32.xlu1 %v1733_v61  ;;  %3827 = vmatpush3.bf16.msra.mxu0 %v3826_v7  ;;  %v3457_v61 = vld [vmem:[%s4559_s4 + $0x38] sm:$0xff]  ;;  %v3459_v7 = vld [vmem:[%s4529_s5 + $0x1] ss:$0 sm:$0xff] }
 0xb5b   : > { %3840 = vmatprep.subr.bf16.mxu0 %v3948_v11 }
 0xbe7   : > { %v1735_v62 = vpop.xlane.xlu1 %1734 }
 0xbe8   : > { %v1736_v63 = vmul.f32 0.03125, %v1735_v62 }
 0xbea   : > { %v1737_v0 = vsub.f32 %v1730_v60, %v1736_v63  ;;  %v3456_v60 = vld [vmem:[%s4559_s4 + $0x30] sm:$0xff] }
 0xbeb   : > { %v3844_v62 = vpack.c.bf16 %v3457_v61, %v3456_v60 }
 0xbec   : > { %v1738_v1 = vmul.f32 %v1737_v0, %v1737_v0 }
 0xbee   : > { %v1739_v2 = vsel %vm645_vm0, %v1738_v1, 0.0 }
 0xbef   : > { %1740 = vadd.xlane.f32.xlu1 %v1739_v2 }
 0xc7c   : > { %v1741_v8 = vpop.xlane.xlu1 %1740 }
 0xc7d   : > { %v1742_v9 = vmul.f32 0.03125, %v1741_v8 }
 0xc7f   : > { %v1743_v10 = vadd.f32 1e-12, %v1742_v9 }
 0xc81   : > { %3910 = vrsqrt.f32 %v1743_v10 }
 0xc8b   : > { %v3911_v12 = vpop.eup %3910 }
 0xc8c   : > { %v1745_v15 = vmul.f32 %v3911_v12, %v1737_v0 }
 0xc8e   : > { %v1752_v17 = vmul.f32 %v3446_v13, %v1745_v15 }
 0xc90   : > { %v1759_v18 = vadd.f32 %v3447_v16, %v1752_v17 }
 0xc92   : > { %3683 = vmatmul.mubr.msk.f32.vlgmr.msra.gmra.mrb[12].mxu0 %vm645_vm0, %v1759_v18 }
 0xc93   : > { %3712 = vmatprep.mubr.msk.f32.mxu0 %vm3949_vm1, %v3950_v14  ;;  %3842 = vmatpush3.bf16.msra.mxu0 %v3841_v59 }
 0xc94   : > { %3843 = vmatprep.subr.bf16.mxu0 %v3948_v11 }
 0xc97   : > { %3845 = vmatpush3.bf16.msra.mxu0 %v3844_v62 }
 0xc98   : > { %3715 = vmatprep.subr.mxu0 %v3950_v14 }
 0xd65   : > { %v1840_v34 = vpop.f32.mrb[12].mxu0 }
 0xd66   : > { %v1841_v35 = vadd.f32 %v3448_v33, %v1840_v34  ;;  %v3684_v36 = vpop.f32.mrb[13].mxu0 }
 0xd67   : > { %v3462_v36 = vld [vmem:[%s4530_s6 + $0x28] sm:$0xff] }
 0xd68   : > { %v1845_v37 = vmul.f32 0.044715, %v1841_v35  ;;  %v1844_v44 = vmul.f32 0.5, %v1841_v35 }
 0xd6a   : > { %v1846_v39 = vmul.f32 %v1845_v37, %v1841_v35 }
 0xd6c   : > { %v1847_v40 = vmul.f32 %v1846_v39, %v1841_v35 }
 0xd6e   : > { %v1848_v41 = vadd.f32 %v1847_v40, %v1841_v35 }
 0xd70   : > { %v1849_v42 = vmul.f32 0.7978846, %v1848_v41 }
 0xd72   : > { %3912 = vtanh.f32 %v1849_v42 }
 0xd7c   : > { %v3913_v43 = vpop.eup %3912 }
 0xd7d   : > { %v1851_v45 = vadd.f32 1.0, %v3913_v43 }
 0xd7f   : > { %v1852_v46 = vmul.f32 %v1851_v45, %v1844_v44 }
 0xd81   : > { %3702 = vmatmul.mubr.msk.f32.vlgmr.msra.gmra.mrb[14].mxu1 %vm1868_vm3, %v1852_v46  ;;  %v3461_v46 = vld [vmem:[%s4530_s6 + $0x20] sm:$0xff] }
 0xd82   : > { %3722 = vmatprep.mubr.msk.f32.mxu1 %vm3949_vm1, %v3950_v14 }
 0xe54   : > { %v1938_v48 = vpop.f32.mrb[14].mxu1 }
 0xe55   : > { %v1939_v49 = vadd.f32 %v3450_v47, %v1938_v48  ;;  %v3703_v50 = vpop.f32.mrb[15].mxu1 }
 0xe57   : > { %v1942_v51 = vadd.f32 %v1939_v49, %v1759_v18 }
 0xe59   : > { %v1945_v52 = vsel %vm645_vm0, %v1942_v51, 0.0 }
 0xe5a   : > { %1946 = vadd.xlane.f32.xlu1 %v1945_v52 }
 0xee7   : > { %v1947_v53 = vpop.xlane.xlu1 %1946 }
 0xee8   : > { %v1948_v27 = vmul.f32 0.03125, %v1947_v53 }
 0xeea   : > { %v1949_v54 = vsub.f32 %v1942_v51, %v1948_v27 }
 0xeec   : > { %v1950_v55 = vmul.f32 %v1949_v54, %v1949_v54 }
 0xeee   : > { %v1951_v56 = vsel %vm645_vm0, %v1950_v55, 0.0 }
 0xeef   : > { %1952 = vadd.xlane.f32.xlu1 %v1951_v56 }
 0xf7c   : > { %v1953_v63 = vpop.xlane.xlu1 %1952 }
 0xf7d   : > { %v1954_v0 = vmul.f32 0.03125, %v1953_v63 }
 0xf7f   : > { %v1955_v1 = vadd.f32 1e-12, %v1954_v0 }
 0xf81   : > { %3914 = vrsqrt.f32 %v1955_v1 }
 0xf8b   : > { %v3915_v2 = vpop.eup %3914 }
 0xf8c   : > { %v1957_v4 = vmul.f32 %v3915_v2, %v1949_v54 }
 0xf8e   : > { %v1964_v24 = vmul.f32 %v3452_v3, %v1957_v4 }
 0xf90   : > { %v4316_v6 = vadd.f32 %v3453_v5, %v1964_v24 }
 0xf92   : > { %3713 = vmatmul.mubr.msk.f32.vlgmr.msra.gmra.mrb[14].mxu0 %vm645_vm0, %v4316_v6 }
 0xf93   : > { %3717 = vmatprep.mubr.msk.f32.mxu0 %vm3949_vm1, %v3950_v14 }
0x1065   : > { %v2054_v8 = vpop.f32.mrb[14].mxu0 }
0x1066   : > { %v4325_v9 = vadd.f32 %v3459_v7, %v2054_v8  ;;  %v3714_v10 = vpop.f32.mrb[15].mxu0  ;;  %v3463_v8 = vld [vmem:[%s4530_s6 + $0x30] sm:$0xff] }
0x1068   : > { %2229 = vrot.lane.b32.xlu0 %v4325_v9, %s3953_s21  ;;  %2064 = vrot.lane.b32.xlu1 %v4325_v9, %s3952_s0  ;;  %s4564_s0 = smov 64   ;;  %s4565_s21 = smov 112  }
0x106c   : > { %2227 = vrot.lane.b32.xlu0 %v4325_v9, %s3951_s30  ;;  %s4563_s30 = smov 80  }
0x10da   : > { %v2065_v12 = vpop.permute.xlu1 %2064  ;;  %v2230_v13 = vpop.permute.xlu0 %2229 }
0x10db   : > { %3716 = vmatpush3.xpose.msk.msra.mxu0 %vm771_vm2, %v2065_v12 }
0x10dc   : > { %3725 = vmatprep.subr.mxu0 %v3950_v14 }
0x10de   : > { %3718 = vmatmul.mubr.msk.f32.vlgmr.msra.gmra.mrb[16].mxu0 %vm771_vm2, %v4325_v9  ;;  %v2228_v15 = vpop.permute.xlu0 %2227 }
0x10df   : > { %3726 = vmatpush3.xpose.msk.msra.mxu0 %vm771_vm2, %v2230_v13  ;;  %3727 = vmatprep.mubr.msk.f32.mxu0 %vm3949_vm1, %v3950_v14 }
0x10e0   : > { %3735 = vmatprep.subr.mxu0 %v3950_v14 }
0x10e2   : > { %3728 = vmatmul.mubr.msk.f32.vlgmr.msra.gmra.mrb[18].mxu0 %vm771_vm2, %v2228_v15 }
0x10e3   : > { %3737 = vmatprep.mubr.msk.f32.mxu0 %vm3949_vm1, %v3950_v14  ;;  %3736 = vmatpush3.msra.mxu0 %v3462_v36 }
0x10e4   : > { %3745 = vmatprep.subr.mxu0 %v3950_v14 }
0x11b1   : > { %v2136_v16 = vpop.f32.mrb[16].mxu0 }
0x11b2   : > { %v2137_v17 = vadd.f32 %v2136_v16, %v4144_v38  ;;  %v3719_v18 = vpop.f32.mrb[17].mxu0 }
0x11b4   : > { %v2140_v19 = vsel %vm771_vm2, %v2137_v17, -inf }
0x11b5   : > { %2141 = vmax.xlane.f32.xlu0 %v2140_v19  ;;  %v2301_v20 = vpop.f32.mrb[18].mxu0 }
0x11b6   : > { %v2302_v21 = vadd.f32 %v2301_v20, %v4144_v38  ;;  %v3729_v22 = vpop.f32.mrb[19].mxu0 }
0x11b8   : > { %v2305_v23 = vsel %vm771_vm2, %v2302_v21, -inf }
0x11b9   : > { %2306 = vmax.xlane.f32.xlu1 %v2305_v23 }
0x11ca   : > { %2316 = vrot.lane.b32.xlu1 %v4325_v9, %s3954_s25 }
0x11ce   : > { %2540 = vrot.lane.b32.xlu1 %v4325_v9, %s4563_s30 }
0x1242   : > { %v2142_v25 = vpop.xlane.xlu0 %2141 }
0x1243   : > { %v2143_v26 = vsub.f32 %v2137_v17, %v2142_v25 }
0x1245   : > { %v2144_v28 = vmul.f32 1.442695, %v2143_v26 }
0x1246   : > { %v2307_v29 = vpop.xlane.xlu1 %2306 }
0x1247   : > { %3916 = vpow2.f32 %v2144_v28  ;;  %v2308_v30 = vsub.f32 %v2302_v21, %v2307_v29 }
0x1249   : > { %v2309_v31 = vmul.f32 1.442695, %v2308_v30 }
0x124a   : > { %v2317_v43 = vpop.permute.xlu1 %2316 }
0x124b   : > { %3918 = vpow2.f32 %v2309_v31 }
0x124e   : > { %v2541_v50 = vpop.permute.xlu1 %2540 }
0x1251   : > { %v3917_v32 = vpop.eup %3916 }
0x1252   : > { %v2146_v33 = vsel %vm771_vm2, %v3917_v32, 0.0 }
0x1253   : > { %2147 = vadd.xlane.f32.xlu0 %v2146_v33 }
0x1255   : > { %v3919_v34 = vpop.eup %3918 }
0x1256   : > { %v2311_v35 = vsel %vm771_vm2, %v3919_v34, 0.0 }
0x1257   : > { %2312 = vadd.xlane.f32.xlu0 %v2311_v35 }
0x126d   : > { %2151 = vrot.lane.b32.xlu0 %v4325_v9, %s4564_s0 }
0x1271   : > { %2538 = vrot.lane.b32.xlu0 %v4325_v9, %s4565_s21  ;;  %s638_s21 = scalar_lea.vmem %s4544_s20, %s4571_s24 }
0x12e0   : > { %v2148_v37 = vpop.xlane.xlu0 %2147 }
0x12e1   : > { %3920 = vrcp.f32 %v2148_v37 }
0x12e4   : > { %v2313_v39 = vpop.xlane.xlu0 %2312 }
0x12e5   : > { %3922 = vrcp.f32 %v2313_v39 }
0x12e8   : > { %v2152_v40 = vpop.permute.xlu0 %2151 }
0x12e9   : > { %3721 = vmatpush3.msra.mxu1 %v2152_v40 }
0x12ea   : > { %3730 = vmatprep.subr.mxu1 %v3950_v14 }
0x12eb   : > { %v3921_v41 = vpop.eup %3920 }
0x12ec   : > { %v2150_v42 = vmul.f32 %v3921_v41, %v3917_v32  ;;  %v2539_v52 = vpop.permute.xlu0 %2538 }
0x12ee   : > { %3723 = vmatmul.mubr.msk.f32.vlgmr.msra.gmra.mrb[16].mxu1 %vm771_vm2, %v2150_v42 }
0x12ef   : > { %v3923_v44 = vpop.eup %3922  ;;  %3731 = vmatpush3.msra.mxu1 %v2317_v43  ;;  %3732 = vmatprep.mubr.msk.f32.mxu1 %vm3949_vm1, %v3950_v14 }
0x12f0   : > { %v2315_v45 = vmul.f32 %v3923_v44, %v3919_v34  ;;  %3740 = vmatprep.subr.mxu1 %v3950_v14  ;;  %v3482_v34 = vld [vmem:[%s4531_s7 + $0x1] ss:$0 sm:$0xff] }
0x12f2   : > { %3733 = vmatmul.mubr.msk.f32.vlgmr.msra.gmra.mrb[18].mxu1 %vm771_vm2, %v2315_v45 }
0x12f3   : > { %3742 = vmatprep.mubr.msk.f32.mxu1 %vm3949_vm1, %v3950_v14  ;;  %3741 = vmatpush3.msra.mxu1 %v3461_v46  ;;  %v3487_v46 = vld [vmem:[%s4534_s10 + $0x20] sm:$0xff] }
0x12f4   : > { %3750 = vmatprep.subr.mxu1 %v3950_v14 }
0x13c1   : > { %v2223_v47 = vpop.f32.mrb[16].mxu1 }
0x13c2   : > { %v3724_v48 = vpop.f32.mrb[17].mxu1  ;;  %3743 = vmatmul.mubr.msk.f32.vlgmr.msra.gmra.mrb[20].mxu1 %vm771_vm2, %v2223_v47  ;;  %v3488_v47 = vld [vmem:[%s4534_s10 + $0x28] sm:$0xff] }
0x13c3   : > { %3752 = vmatprep.mubr.msk.f32.mxu1 %vm3949_vm1, %v3950_v14  ;;  %v3847_v48 = vpack.c.bf16 %v3488_v47, %v3487_v46 }
0x13c5   : > { %v2388_v49 = vpop.f32.mrb[18].mxu1 }
0x13c6   : > { %v3734_v51 = vpop.f32.mrb[19].mxu1  ;;  %3738 = vmatmul.mubr.msk.f32.vlgmr.msra.gmra.mrb[20].mxu0 %vm771_vm2, %v2388_v49  ;;  %v3490_v49 = vld [vmem:[%s4534_s10 + $0x38] sm:$0xff] }
0x13c7   : > { %3746 = vmatpush3.xpose.msk.msra.mxu0 %vm771_vm2, %v2541_v50  ;;  %3747 = vmatprep.mubr.msk.f32.mxu0 %vm3949_vm1, %v3950_v14 }
0x13c8   : > { %3755 = vmatprep.subr.mxu0 %v3950_v14 }
0x13ca   : > { %3748 = vmatmul.mubr.msk.f32.vlgmr.msra.gmra.mrb[22].mxu0 %vm771_vm2, %v2539_v52 }
0x13cb   : > { %3757 = vmatprep.mubr.msk.f32.mxu0 %vm3949_vm1, %v3950_v14  ;;  %3756 = vmatpush3.msra.mxu0 %v3463_v8 }
0x13cc   : > { %3765 = vmatprep.subr.mxu0 %v3950_v14 }
0x1495   : > { %v2534_v53 = vpop.f32.mrb[20].mxu1 }
0x1496   : > { %v3744_v27 = vpop.f32.mrb[21].mxu1 }
0x1499   : > { %v2461_v54 = vpop.f32.mrb[20].mxu0 }
0x149a   : > { %v2535_v55 = vadd.f32 %v2534_v53, %v2461_v54  ;;  %v3739_v56 = vpop.f32.mrb[21].mxu0  ;;  %v3485_v54 = vld [vmem:[%s4532_s8 + $0x1] ss:$0 sm:$0xff] }
0x149b   : > { %v3486_v56 = vld [vmem:[%s4533_s9 + $0x1] ss:$0 sm:$0xff] }
0x149d   : > { %v2612_v57 = vpop.f32.mrb[22].mxu0 }
0x149e   : > { %v2613_v58 = vadd.f32 %v2612_v57, %v4144_v38  ;;  %v3749_v59 = vpop.f32.mrb[23].mxu0 }
0x149f   : > { %v3494_v59 = vld [vmem:[%s4536_s12 + $0x40] sm:$0xff] }
0x14a0   : > { %v2616_v60 = vsel %vm771_vm2, %v2613_v58, -inf }
0x14a1   : > { %2617 = vmax.xlane.f32.xlu1 %v2616_v60  ;;  %v3495_v60 = vld [vmem:[%s4536_s12 + $0x48] sm:$0xff] }
0x14b2   : > { %2779 = vrot.lane.b32.xlu1 %v4325_v9, %s4566_s27 }
0x14b6   : > { %2777 = vrot.lane.b32.xlu1 %v4325_v9, %s4567_s29 }
0x152e   : > { %v2618_v61 = vpop.xlane.xlu1 %2617 }
0x152f   : > { %v2619_v62 = vsub.f32 %v2613_v58, %v2618_v61  ;;  %v3853_v61 = vpack.c.bf16 %v3495_v60, %v3494_v59 }
0x1531   : > { %v2620_v63 = vmul.f32 1.442695, %v2619_v62  ;;  %v3496_v62 = vld [vmem:[%s4536_s12 + $0x50] sm:$0xff] }
0x1532   : > { %v2780_v5 = vpop.permute.xlu1 %2779 }
0x1533   : > { %3924 = vpow2.f32 %v2620_v63  ;;  %v3497_v63 = vld [vmem:[%s4536_s12 + $0x58] sm:$0xff] }
0x1536   : > { %v2778_v7 = vpop.permute.xlu1 %2777 }
0x153d   : > { %v3925_v0 = vpop.eup %3924 }
0x153e   : > { %v2622_v1 = vsel %vm771_vm2, %v3925_v0, 0.0 }
0x153f   : > { %2623 = vadd.xlane.f32.xlu0 %v2622_v1  ;;  %v3499_v1 = vld [vmem:[%s4536_s12 + $0x68] sm:$0xff] }
0x1555   : > { %2627 = vrot.lane.b32.xlu0 %v4325_v9, %s4568_s1 }
0x15cc   : > { %v2624_v2 = vpop.xlane.xlu0 %2623 }
0x15cd   : > { %3926 = vrcp.f32 %v2624_v2 }
0x15d0   : > { %v2628_v3 = vpop.permute.xlu0 %2627 }
0x15d1   : > { %3751 = vmatpush3.msra.mxu1 %v2628_v3  ;;  %v3500_v3 = vld [vmem:[%s4536_s12 + $0x70] sm:$0xff] }
0x15d2   : > { %3760 = vmatprep.subr.mxu1 %v3950_v14 }
0x15d7   : > { %v3927_v4 = vpop.eup %3926 }
0x15d8   : > { %v2626_v24 = vmul.f32 %v3927_v4, %v3925_v0  ;;  %v3856_v0 = vpack.c.bf16 %v3497_v63, %v3496_v62  ;;  %v3501_v4 = vld [vmem:[%s4536_s12 + $0x78] sm:$0xff] }
0x15da   : > { %3753 = vmatmul.mubr.msk.f32.vlgmr.msra.gmra.mrb[22].mxu1 %vm771_vm2, %v2626_v24  ;;  %v3492_v24 = vld [vmem:[%s4535_s11 + $0x1] ss:$0 sm:$0xff] }
0x15db   : > { %3761 = vmatpush3.xpose.msk.msra.mxu1 %vm771_vm2, %v2780_v5  ;;  %3762 = vmatprep.mubr.msk.f32.mxu1 %vm3949_vm1, %v3950_v14  ;;  %v3862_v5 = vpack.c.bf16 %v3501_v4, %v3500_v3 }
0x15dc   : > { %3770 = vmatprep.subr.mxu1 %v3950_v14 }
0x15de   : > { %3763 = vmatmul.mubr.msk.f32.vlgmr.msra.gmra.mrb[24].mxu1 %vm771_vm2, %v2778_v7 }
0x15df   : > { %3772 = vmatprep.mubr.msk.f32.mxu1 %vm3949_vm1, %v3950_v14 }
0x16ad   : > { %v2699_v10 = vpop.f32.mrb[22].mxu1 }
0x16ae   : > { %v3754_v12 = vpop.f32.mrb[23].mxu1  ;;  %3758 = vmatmul.mubr.msk.f32.vlgmr.msra.gmra.mrb[24].mxu0 %vm771_vm2, %v2699_v10 }
0x16af   : > { %3767 = vmatprep.mubr.msk.f32.mxu0 %vm3949_vm1, %v3950_v14 }
0x16b1   : > { %v2851_v13 = vpop.f32.mrb[24].mxu1 }
0x16b2   : > { %v2852_v15 = vadd.f32 %v2851_v13, %v4144_v38  ;;  %v3764_v16 = vpop.f32.mrb[25].mxu1  ;;  %v3464_v38 = vld [vmem:[%s4530_s6 + $0x38] sm:$0xff] }
0x16b3   : > { %3771 = vmatpush3.msra.mxu1 %v3464_v38 }
0x16b4   : > { %v2855_v17 = vsel %vm771_vm2, %v2852_v15, -inf  ;;  %3852 = vmatprep.subr.bf16.mxu1 %v3948_v11 }
0x16b5   : > { %2856 = vmax.xlane.f32.xlu0 %v2855_v17 }
0x16cb   : > { %2866 = vrot.lane.b32.xlu0 %v4325_v9, %s4569_s2 }
0x1742   : > { %v2857_v18 = vpop.xlane.xlu0 %2856 }
0x1743   : > { %v2858_v19 = vsub.f32 %v2852_v15, %v2857_v18 }
0x1745   : > { %v2859_v20 = vmul.f32 1.442695, %v2858_v19 }
0x1746   : > { %v2867_v21 = vpop.permute.xlu0 %2866 }
0x1747   : > { %3928 = vpow2.f32 %v2859_v20  ;;  %3766 = vmatpush3.msra.mxu0 %v2867_v21 }
0x1748   : > { %3846 = vmatprep.subr.bf16.mxu0 %v3948_v11 }
0x1751   : > { %v3929_v22 = vpop.eup %3928 }
0x1752   : > { %v2861_v23 = vsel %vm771_vm2, %v3929_v22, 0.0 }
0x1753   : > { %2862 = vadd.xlane.f32.xlu1 %v2861_v23 }
0x1781   : > { %v2772_v9 = vpop.f32.mrb[24].mxu0 }
0x1782   : > { %v2776_v25 = vadd.f32 %v2772_v9, %v2535_v55  ;;  %v3759_v26 = vpop.f32.mrb[25].mxu0 }
0x17e0   : > { %v2863_v28 = vpop.xlane.xlu1 %2862 }
0x17e1   : > { %3930 = vrcp.f32 %v2863_v28 }
0x17eb   : > { %v3931_v29 = vpop.eup %3930 }
0x17ec   : > { %v2865_v30 = vmul.f32 %v3931_v29, %v3929_v22  ;;  %v3503_v22 = vld [vmem:[%s4537_s13 + $0x1] ss:$0 sm:$0xff] }
0x17ee   : > { %3768 = vmatmul.mubr.msk.f32.vlgmr.msra.gmra.mrb[26].mxu0 %vm771_vm2, %v2865_v30 }
0x17ef   : > { %3783 = vmatprep.mubr.msk.f32.mxu0 %vm3949_vm1, %v3950_v14  ;;  %3848 = vmatpush3.bf16.msra.mxu0 %v3847_v48  ;;  %v3278_v48 = vld [vmem:[%s4541_s17] sm:$0x1] }
0x17f0   : > { %3849 = vmatprep.subr.bf16.mxu0 %v3948_v11 }
0x18c1   : > { %v2938_v31 = vpop.f32.mrb[26].mxu0 }
0x18c2   : > { %v3769_v32 = vpop.f32.mrb[27].mxu0  ;;  %3773 = vmatmul.mubr.msk.f32.vlgmr.msra.gmra.mrb[26].mxu1 %vm771_vm2, %v2938_v31 }
0x18c3   : > { %3802 = vmatprep.mubr.msk.f32.mxu1 %vm3949_vm1, %v3950_v14  ;;  %3854 = vmatpush3.bf16.msra.mxu1 %v3853_v61 }
0x18c4   : > { %3855 = vmatprep.subr.bf16.mxu1 %v3948_v11 }
0x18c7   : > { %3857 = vmatpush3.bf16.msra.mxu1 %v3856_v0 }
0x18c8   : > { %3858 = vmatprep.subr.bf16.mxu1 %v3948_v11 }
0x1995   : > { %v3011_v33 = vpop.f32.mrb[26].mxu1 }
0x1996   : > { %v3015_v35 = vadd.f32 %v3011_v33, %v2776_v25  ;;  %v3774_v36 = vpop.f32.mrb[27].mxu1  ;;  %v3274_v33 = vld [vmem:[%s4540_s16] sm:$0xff] }
0x1997   : > { %v3276_v36 = vld [vmem:[%s4540_s16 + $0x10] sm:$0xff] }
0x1998   : > { %v3024_v37 = vadd.f32 %v3482_v34, %v3015_v35  ;;  %v3275_v34 = vld [vmem:[%s4540_s16 + $0x8] sm:$0xff] }
0x1999   : > { %v3865_v35 = vpack.c.bf16 %v3275_v34, %v3274_v33 }
0x199a   : > { %v3025_v39 = vadd.f32 %v3024_v37, %v4316_v6  ;;  %v3489_v6 = vld [vmem:[%s4534_s10 + $0x30] sm:$0xff]  ;;  %v3277_v37 = vld [vmem:[%s4540_s16 + $0x18] sm:$0xff] }
0x199b   : > { %v3850_v50 = vpack.c.bf16 %v3490_v49, %v3489_v6 }
0x199c   : > { %v3030_v40 = vsel %vm645_vm0, %v3025_v39, 0.0 }
0x199d   : > { %3031 = vadd.xlane.f32.xlu1 %v3030_v40  ;;  %3851 = vmatpush3.bf16.msra.mxu0 %v3850_v50 }
0x199e   : > { %3864 = vmatprep.subr.bf16.mxu0 %v3948_v11 }
0x1a2a   : > { %v3032_v41 = vpop.xlane.xlu1 %3031 }
0x1a2b   : > { %v3033_v42 = vmul.f32 0.03125, %v3032_v41 }
0x1a2d   : > { %v3034_v43 = vsub.f32 %v3025_v39, %v3033_v42  ;;  %v3868_v39 = vpack.c.bf16 %v3277_v37, %v3276_v36 }
0x1a2f   : > { %v3035_v44 = vmul.f32 %v3034_v43, %v3034_v43 }
0x1a31   : > { %v3036_v45 = vsel %vm645_vm0, %v3035_v44, 0.0  ;;  %v3507_v44 = vld [vmem:[%s4538_s14 + $0x1] ss:$0 sm:$0xff] }
0x1a32   : > { %3037 = vadd.xlane.f32.xlu1 %v3036_v45  ;;  %v3508_v45 = vld [vmem:[%s4539_s15 + $0x1] ss:$0 sm:$0xff] }
0x1abf   : > { %v3038_v51 = vpop.xlane.xlu1 %3037 }
0x1ac0   : > { %v3039_v52 = vmul.f32 0.03125, %v3038_v51  ;;  %v3353_v51 = vld [vmem:[%s4542_s18] sm:$0x1] }
0x1ac2   : > { %v3040_v53 = vadd.f32 1e-12, %v3039_v52 }
0x1ac4   : > { %3932 = vrsqrt.f32 %v3040_v53 }
0x1ace   : > { %v3933_v27 = vpop.eup %3932 }
0x1acf   : > { %v3042_v55 = vmul.f32 %v3933_v27, %v3034_v43 }
0x1ad1   : > { %v3049_v57 = vmul.f32 %v3485_v54, %v3042_v55  ;;  %v3359_v54 = vld [vmem:[#allocation2] sm:$0x1] }
0x1ad3   : > { %v3056_v58 = vadd.f32 %v3486_v56, %v3049_v57 }
0x1ad5   : > { %3784 = vmatmul.mubr.msk.f32.vlgmr.msra.gmra.mrb[28].mxu0 %vm645_vm0, %v3056_v58 }
0x1ad6   : > { %3813 = vmatprep.mubr.msk.f32.mxu0 %vm3949_vm1, %v3950_v14  ;;  %v3498_v14 = vld [vmem:[%s4536_s12 + $0x60] sm:$0xff]  ;;  %3866 = vmatpush3.bf16.msra.mxu0 %v3865_v35 }
0x1ad7   : > { %v3859_v2 = vpack.c.bf16 %v3499_v1, %v3498_v14  ;;  %3867 = vmatprep.subr.bf16.mxu0 %v3948_v11 }
0x1ad9   : > { %3860 = vmatpush3.bf16.msra.mxu1 %v3859_v2 }
0x1ada   : > { %3861 = vmatprep.subr.bf16.mxu1 %v3948_v11  ;;  %3869 = vmatpush3.bf16.msra.mxu0 %v3868_v39 }
0x1add   : > { %3863 = vmatpush3.bf16.msra.mxu1 %v3862_v5 }
0x1ba8   : > { %v3139_v7 = vpop.f32.mrb[28].mxu0 }
0x1ba9   : > { %v3140_v8 = vadd.f32 %v3492_v24, %v3139_v7  ;;  %v3785_v10 = vpop.f32.mrb[29].mxu0 }
0x1bab   : > { %v3144_v12 = vmul.f32 0.044715, %v3140_v8  ;;  %v3143_v19 = vmul.f32 0.5, %v3140_v8 }
0x1bad   : > { %v3145_v13 = vmul.f32 %v3144_v12, %v3140_v8 }
0x1baf   : > { %v3146_v15 = vmul.f32 %v3145_v13, %v3140_v8 }
0x1bb1   : > { %v3147_v16 = vadd.f32 %v3146_v15, %v3140_v8 }
0x1bb3   : > { %v3148_v17 = vmul.f32 0.7978846, %v3147_v16 }
0x1bb5   : > { %3934 = vtanh.f32 %v3148_v17 }
0x1bbf   : > { %v3935_v18 = vpop.eup %3934 }
0x1bc0   : > { %v3150_v20 = vadd.f32 1.0, %v3935_v18 }
0x1bc2   : > { %v3151_v21 = vmul.f32 %v3150_v20, %v3143_v19 }
0x1bc4   : > { %3803 = vmatmul.mubr.msk.f32.vlgmr.msra.gmra.mrb[28].mxu1 %vm1868_vm3, %v3151_v21 }
0x1c97   : > { %v3238_v23 = vpop.f32.mrb[28].mxu1 }
0x1c98   : > { %v3239_v38 = vadd.f32 %v3503_v22, %v3238_v23  ;;  %v3804_v9 = vpop.f32.mrb[29].mxu1 }
0x1c9a   : > { %v3242_v25 = vadd.f32 %v3239_v38, %v3056_v58 }
0x1c9c   : > { %v3247_v26 = vsel %vm645_vm0, %v3242_v25, 0.0 }
0x1c9d   : > { %3248 = vadd.xlane.f32.xlu1 %v3247_v26 }
0x1d2a   : > { %v3249_v28 = vpop.xlane.xlu1 %3248 }
0x1d2b   : > { %v3250_v29 = vmul.f32 0.03125, %v3249_v28 }
0x1d2d   : > { %v3251_v30 = vsub.f32 %v3242_v25, %v3250_v29 }
0x1d2f   : > { %v3252_v31 = vmul.f32 %v3251_v30, %v3251_v30 }
0x1d31   : > { %v3253_v32 = vsel %vm645_vm0, %v3252_v31, 0.0 }
0x1d32   : > { %3254 = vadd.xlane.f32.xlu1 %v3253_v32 }
0x1dbf   : > { %v3255_v40 = vpop.xlane.xlu1 %3254 }
0x1dc0   : > { %v3256_v41 = vmul.f32 0.03125, %v3255_v40 }
0x1dc2   : > { %v3257_v42 = vadd.f32 1e-12, %v3256_v41 }
0x1dc4   : > { %3936 = vrsqrt.f32 %v3257_v42 }
0x1dce   : > { %v3937_v43 = vpop.eup %3936 }
0x1dcf   : > { %v3259_v11 = vmul.f32 %v3937_v43, %v3251_v30 }
0x1dd1   : > { %v3266_v46 = vmul.f32 %v3507_v44, %v3259_v11 }
0x1dd3   : > { %v3273_v47 = vadd.f32 %v3508_v45, %v3266_v46 }
0x1dd5   : > { %3814 = vmatmul.mubr.msk.f32.vlgmr.msra.gmra.mrb[30].mxu0 %vm645_vm0, %v3273_v47 }
0x1ea8   : > { %v3348_v6 = vpop.f32.mrb[30].mxu0 }
0x1ea9   : > { %v3349_v49 = vadd.f32 %v3348_v6, %v3278_v48  ;;  %v3815_v50 = vpop.f32.mrb[31].mxu0 }
0x1eab   : > { %3938 = vtanh.f32 %v3349_v49 }
0x1eb5   : > { %v3939_v52 = vpop.eup %3938 }
0x1eb6   : > { %v3354_v53 = vmul.f32 %v3939_v52, %v3353_v51 }
0x1eb8   : > { %v3356_v27 = vsel %vm3355_vm4, %v3354_v53, 0.0 }
0x1eb9   : > { %3357 = vadd.xlane.f32.xlu0 %v3356_v27 }
0x1f46   : > { %v3358_v55 = vpop.xlane.xlu0 %3357 }
0x1f47   : > { %v3360_v56 = vadd.f32 %v3359_v54, %v3358_v55 }
0x1f49   : > { %3362 = vst.msk [vmem:[%s638_s21] sm:$0x1] %vm3361_vm5, %v3360_v56 }
0x1f4a PF: > { %s32_s23 = sadd.s32 1, %s3946_s23  }
0x1f4b   : > { %p29_p4 = scmp.ge.s32.totalorder %s32_s23, 4  }
0x1f4d   :  { %31 = sbr.rel (!%p29_p4) target bundleno = 6 (0x6), region = 145 }

</bundles_post_ra>
